<compile_context>
chip_gen: v7x
topology: tpu7x:2x2x1
jax: 0.10.0
libtpu: 0.0.40
codegen_flags: <defaults>
</compile_context>

<pallas_src>
import jax
import jax.numpy as jnp
from jax import lax
from jax.experimental import pallas as pl
from jax.experimental.pallas import tpu as pltpu


def _make_conv_relu_kernel(KH, KW, dilation, Ho, Wo, Cin, Cout):
    M = Ho * Wo

    def kernel(x_ref, w_ref, b_ref, o_ref):
        # x_ref: (1, Hp, Wp, Cin)   padded NHWC slab for one image (bf16)
        # w_ref: (KH*KW, Cout, Cin) conv weights, one (Cout, Cin) slab per tap (bf16)
        # b_ref: (Cout, 1)          bias column (f32)
        # o_ref: (1, Cout, M)       output tile, M = Ho*Wo lane-dense
        x = x_ref[0]                                       # (Hp, Wp, Cin)
        acc = jnp.zeros((Cout, M), jnp.float32)            # a few vregs
        for kh in range(KH):                               # 9 taps, unrolled at trace time
            for kw in range(KW):
                t = kh * KW + kw
                xt = x[kh * dilation: kh * dilation + Ho,
                       kw * dilation: kw * dilation + Wo, :]   # (Ho, Wo, Cin)
                xt = xt.reshape(M, Cin)                        # leading-dim merge (Wo % 8 == 0)
                # (Cout, Cin) x (M, Cin) contracted over Cin -> (Cout, M), f32 accumulate.
                acc = acc + lax.dot_general(
                    w_ref[t], xt,
                    dimension_numbers=(((1,), (1,)), ((), ())),
                    preferred_element_type=jnp.float32)
        acc = acc + b_ref[...]                             # fused bias (broadcast over lanes)
        o_ref[0] = jnp.maximum(acc, 0.0).astype(o_ref.dtype)

    return kernel


def basic_block_forward(x_nchw, w_oihw, bias, *, padding=0, dilation=1,
                        compute_dtype=jnp.bfloat16):
    """relu(conv2d(x, w, b, stride=1, padding, dilation)) == BasicBlock.forward.

    Matmul operands run in `compute_dtype` (bf16 by default); accumulation,
    bias, ReLU and the returned activation stay in float32.
    """
    N, Cin, H, W = x_nchw.shape
    Cout, _, KH, KW = w_oihw.shape
    Ho = H + 2 * padding - dilation * (KH - 1)
    Wo = W + 2 * padding - dilation * (KW - 1)
    Hp, Wp = H + 2 * padding, W + 2 * padding
    M = Ho * Wo

    # --- cheap layout plumbing: ONE pass over the input, no KH*KW expansion ---
    x_nhwc = jnp.transpose(x_nchw, (0, 2, 3, 1))
    xp = jnp.pad(x_nhwc, ((0, 0), (padding, padding), (padding, padding), (0, 0)))
    xp = xp.astype(compute_dtype)                                   # (N, Hp, Wp, Cin)
    w_taps = jnp.transpose(w_oihw, (2, 3, 0, 1)).reshape(KH * KW, Cout, Cin)
    w_taps = w_taps.astype(compute_dtype)                           # (KH*KW, Cout, Cin)
    b_col = bias.astype(jnp.float32).reshape(Cout, 1)

    kernel = _make_conv_relu_kernel(KH, KW, dilation, Ho, Wo, Cin, Cout)

    out = pl.pallas_call(
        kernel,
        out_shape=jax.ShapeDtypeStruct((N, Cout, M), x_nchw.dtype),
        grid_spec=pltpu.PrefetchScalarGridSpec(
            num_scalar_prefetch=0,
            grid=(N,),            # one image per step; even count -> both v7x TCs busy
            in_specs=[
                pl.BlockSpec((1, Hp, Wp, Cin), lambda n: (n, 0, 0, 0)),
                pl.BlockSpec((KH * KW, Cout, Cin), lambda n: (0, 0, 0)),  # resident
                pl.BlockSpec((Cout, 1), lambda n: (0, 0)),                # resident
            ],
            out_specs=pl.BlockSpec((1, Cout, M), lambda n: (n, 0, 0)),
        ),
        compiler_params=pltpu.CompilerParams(
            dimension_semantics=("parallel",),
            vmem_limit_bytes=32 * 1024 * 1024,   # explicit; huge headroom on v7x's 64 MiB
        ),
    )(xp, w_taps, b_col)

    # (N, Cout, Ho*Wo) -> (N, Cout, Ho, Wo): metadata-only reshape, no transpose.
    return out.reshape(N, Cout, Ho, Wo)


def _reference(x_nchw, w_oihw, bias, *, padding, dilation):
    y = lax.conv_general_dilated(
        x_nchw, w_oihw,
        window_strides=(1, 1),
        padding=[(padding, padding), (padding, padding)],
        rhs_dilation=(dilation, dilation),
        dimension_numbers=("NCHW", "OIHW", "NCHW"),
        precision=lax.Precision.HIGHEST)
    y = y + bias.reshape(1, -1, 1, 1)
    return jnp.maximum(y, 0.0)


if __name__ == "__main__":
    # BasicBlock(c_in=4, c_out=8, kernel=3, padding=1, dilation=1)
    N, C_IN, H, W = 2, 4, 16, 16
    C_OUT, KSZ = 8, 3
    PADDING, DILATION = 1, 1

    key = jax.random.PRNGKey(0)
    kx, kw, kb = jax.random.split(key, 3)
    x = jax.random.normal(kx, (N, C_IN, H, W), dtype=jnp.float32)
    # Deterministic synthetic Conv2d parameters (OIHW weight + bias).
    fan_in = C_IN * KSZ * KSZ
    bound = 1.0 / (fan_in ** 0.5)
    w = jax.random.uniform(kw, (C_OUT, C_IN, KSZ, KSZ), jnp.float32, -bound, bound)
    b = jax.random.uniform(kb, (C_OUT,), jnp.float32, -bound, bound)

    out = basic_block_forward(x, w, b, padding=PADDING, dilation=DILATION)
    out = jax.block_until_ready(out)

    # Tight check: reference with matched operand precision (bf16-rounded x/w,
    # f32 accumulation) -- exactly what the kernel computes.
    x_q = x.astype(jnp.bfloat16).astype(jnp.float32)
    w_q = w.astype(jnp.bfloat16).astype(jnp.float32)
    ref_q = _reference(x_q, w_q, b, padding=PADDING, dilation=DILATION)
    # Loose sanity check: pure-f32 reference (difference = bf16 operand rounding only).
    ref_f32 = _reference(x, w, b, padding=PADDING, dilation=DILATION)

    assert out.shape == ref_f32.shape, (out.shape, ref_f32.shape)
    assert jnp.allclose(out, ref_q, rtol=1e-3, atol=1e-3), \
        "mismatch vs matched-precision (bf16 operand) reference"
    assert jnp.allclose(out, ref_f32, rtol=5e-2, atol=5e-2), \
        "mismatch vs full-f32 reference"

    print("KERNEL_OK")
</pallas_src>

<mosaic_0001>
module attributes {stable_mosaic.version = 11 : i64} {
  func.func @kernel(%arg0: i32, %arg1: memref<1x18x18x4xbf16, #tpu.memory_space<vmem>>, %arg2: memref<9x8x4xbf16, #tpu.memory_space<vmem>>, %arg3: memref<8x1xf32, #tpu.memory_space<vmem>>, %arg4: memref<1x8x256xf32, #tpu.memory_space<vmem>>) attributes {dimension_semantics = [#tpu.dimension_semantics<parallel>], iteration_bounds = array<i64: 2>, scalar_prefetch = 0 : i64, scratch_operands = 0 : i64, tpu.core_type = #tpu.core_type<tc>, window_params = [{transform_indices = @transform_0, window_bounds = array<i64: 1, 18, 18, 4>}, {pipeline_mode = #tpu.pipeline_mode<synchronous>, transform_indices = @transform_1, window_bounds = array<i64: 9, 8, 4>}, {pipeline_mode = #tpu.pipeline_mode<synchronous>, transform_indices = @transform_2, window_bounds = array<i64: 8, 1>}, {transform_indices = @transform_3, window_bounds = array<i64: 1, 8, 256>}]} {
    %c0 = arith.constant 0 : index
    %c0_0 = arith.constant 0 : index
    %c0_1 = arith.constant 0 : index
    %c0_2 = arith.constant 0 : index
    %0 = vector.load %arg1[%c0, %c0_0, %c0_1, %c0_2] : memref<1x18x18x4xbf16, #tpu.memory_space<vmem>>, vector<1x18x18x4xbf16>
    %1 = vector.shape_cast %0 : vector<1x18x18x4xbf16> to vector<18x18x4xbf16>
    %cst = arith.constant 0.000000e+00 : f32
    %2 = vector.broadcast %cst : f32 to vector<8x256xf32>
    %3 = vector.extract_strided_slice %1 {offsets = [0, 0, 0], sizes = [16, 16, 4], strides = [1, 1, 1]} : vector<18x18x4xbf16> to vector<16x16x4xbf16>
    %4 = vector.shape_cast %3 : vector<16x16x4xbf16> to vector<256x4xbf16>
    %c0_3 = arith.constant 0 : index
    %c0_4 = arith.constant 0 : index
    %c0_5 = arith.constant 0 : index
    %5 = vector.load %arg2[%c0_3, %c0_4, %c0_5] : memref<9x8x4xbf16, #tpu.memory_space<vmem>>, vector<1x8x4xbf16>
    %6 = vector.shape_cast %5 : vector<1x8x4xbf16> to vector<8x4xbf16>
    %cst_6 = arith.constant dense<0.000000e+00> : vector<8x256xf32>
    %7 = tpu.matmul %6, %4, %cst_6 {dimension_numbers = #tpu.dot_dimension_numbers<[1], [1], [0], [0], [0, 0, 1, 0], [], []>} : vector<8x4xbf16>, vector<256x4xbf16>, vector<8x256xf32> -> vector<8x256xf32>
    %8 = arith.addf %2, %7 : vector<8x256xf32>
    %9 = vector.extract_strided_slice %1 {offsets = [0, 1, 0], sizes = [16, 16, 4], strides = [1, 1, 1]} : vector<18x18x4xbf16> to vector<16x16x4xbf16>
    %10 = vector.shape_cast %9 : vector<16x16x4xbf16> to vector<256x4xbf16>
    %c1 = arith.constant 1 : index
    %c0_7 = arith.constant 0 : index
    %c0_8 = arith.constant 0 : index
    %11 = vector.load %arg2[%c1, %c0_7, %c0_8] : memref<9x8x4xbf16, #tpu.memory_space<vmem>>, vector<1x8x4xbf16>
    %12 = vector.shape_cast %11 : vector<1x8x4xbf16> to vector<8x4xbf16>
    %cst_9 = arith.constant dense<0.000000e+00> : vector<8x256xf32>
    %13 = tpu.matmul %12, %10, %cst_9 {dimension_numbers = #tpu.dot_dimension_numbers<[1], [1], [0], [0], [0, 0, 1, 0], [], []>} : vector<8x4xbf16>, vector<256x4xbf16>, vector<8x256xf32> -> vector<8x256xf32>
    %14 = arith.addf %8, %13 : vector<8x256xf32>
    %15 = vector.extract_strided_slice %1 {offsets = [0, 2, 0], sizes = [16, 16, 4], strides = [1, 1, 1]} : vector<18x18x4xbf16> to vector<16x16x4xbf16>
    %16 = vector.shape_cast %15 : vector<16x16x4xbf16> to vector<256x4xbf16>
    %c2 = arith.constant 2 : index
    %c0_10 = arith.constant 0 : index
    %c0_11 = arith.constant 0 : index
    %17 = vector.load %arg2[%c2, %c0_10, %c0_11] : memref<9x8x4xbf16, #tpu.memory_space<vmem>>, vector<1x8x4xbf16>
    %18 = vector.shape_cast %17 : vector<1x8x4xbf16> to vector<8x4xbf16>
    %cst_12 = arith.constant dense<0.000000e+00> : vector<8x256xf32>
    %19 = tpu.matmul %18, %16, %cst_12 {dimension_numbers = #tpu.dot_dimension_numbers<[1], [1], [0], [0], [0, 0, 1, 0], [], []>} : vector<8x4xbf16>, vector<256x4xbf16>, vector<8x256xf32> -> vector<8x256xf32>
    %20 = arith.addf %14, %19 : vector<8x256xf32>
    %21 = vector.extract_strided_slice %1 {offsets = [1, 0, 0], sizes = [16, 16, 4], strides = [1, 1, 1]} : vector<18x18x4xbf16> to vector<16x16x4xbf16>
    %22 = vector.shape_cast %21 : vector<16x16x4xbf16> to vector<256x4xbf16>
    %c3 = arith.constant 3 : index
    %c0_13 = arith.constant 0 : index
    %c0_14 = arith.constant 0 : index
    %23 = vector.load %arg2[%c3, %c0_13, %c0_14] : memref<9x8x4xbf16, #tpu.memory_space<vmem>>, vector<1x8x4xbf16>
    %24 = vector.shape_cast %23 : vector<1x8x4xbf16> to vector<8x4xbf16>
    %cst_15 = arith.constant dense<0.000000e+00> : vector<8x256xf32>
    %25 = tpu.matmul %24, %22, %cst_15 {dimension_numbers = #tpu.dot_dimension_numbers<[1], [1], [0], [0], [0, 0, 1, 0], [], []>} : vector<8x4xbf16>, vector<256x4xbf16>, vector<8x256xf32> -> vector<8x256xf32>
    %26 = arith.addf %20, %25 : vector<8x256xf32>
    %27 = vector.extract_strided_slice %1 {offsets = [1, 1, 0], sizes = [16, 16, 4], strides = [1, 1, 1]} : vector<18x18x4xbf16> to vector<16x16x4xbf16>
    %28 = vector.shape_cast %27 : vector<16x16x4xbf16> to vector<256x4xbf16>
    %c4 = arith.constant 4 : index
    %c0_16 = arith.constant 0 : index
    %c0_17 = arith.constant 0 : index
    %29 = vector.load %arg2[%c4, %c0_16, %c0_17] : memref<9x8x4xbf16, #tpu.memory_space<vmem>>, vector<1x8x4xbf16>
    %30 = vector.shape_cast %29 : vector<1x8x4xbf16> to vector<8x4xbf16>
    %cst_18 = arith.constant dense<0.000000e+00> : vector<8x256xf32>
    %31 = tpu.matmul %30, %28, %cst_18 {dimension_numbers = #tpu.dot_dimension_numbers<[1], [1], [0], [0], [0, 0, 1, 0], [], []>} : vector<8x4xbf16>, vector<256x4xbf16>, vector<8x256xf32> -> vector<8x256xf32>
    %32 = arith.addf %26, %31 : vector<8x256xf32>
    %33 = vector.extract_strided_slice %1 {offsets = [1, 2, 0], sizes = [16, 16, 4], strides = [1, 1, 1]} : vector<18x18x4xbf16> to vector<16x16x4xbf16>
    %34 = vector.shape_cast %33 : vector<16x16x4xbf16> to vector<256x4xbf16>
    %c5 = arith.constant 5 : index
    %c0_19 = arith.constant 0 : index
    %c0_20 = arith.constant 0 : index
    %35 = vector.load %arg2[%c5, %c0_19, %c0_20] : memref<9x8x4xbf16, #tpu.memory_space<vmem>>, vector<1x8x4xbf16>
    %36 = vector.shape_cast %35 : vector<1x8x4xbf16> to vector<8x4xbf16>
    %cst_21 = arith.constant dense<0.000000e+00> : vector<8x256xf32>
    %37 = tpu.matmul %36, %34, %cst_21 {dimension_numbers = #tpu.dot_dimension_numbers<[1], [1], [0], [0], [0, 0, 1, 0], [], []>} : vector<8x4xbf16>, vector<256x4xbf16>, vector<8x256xf32> -> vector<8x256xf32>
    %38 = arith.addf %32, %37 : vector<8x256xf32>
    %39 = vector.extract_strided_slice %1 {offsets = [2, 0, 0], sizes = [16, 16, 4], strides = [1, 1, 1]} : vector<18x18x4xbf16> to vector<16x16x4xbf16>
    %40 = vector.shape_cast %39 : vector<16x16x4xbf16> to vector<256x4xbf16>
    %c6 = arith.constant 6 : index
    %c0_22 = arith.constant 0 : index
    %c0_23 = arith.constant 0 : index
    %41 = vector.load %arg2[%c6, %c0_22, %c0_23] : memref<9x8x4xbf16, #tpu.memory_space<vmem>>, vector<1x8x4xbf16>
    %42 = vector.shape_cast %41 : vector<1x8x4xbf16> to vector<8x4xbf16>
    %cst_24 = arith.constant dense<0.000000e+00> : vector<8x256xf32>
    %43 = tpu.matmul %42, %40, %cst_24 {dimension_numbers = #tpu.dot_dimension_numbers<[1], [1], [0], [0], [0, 0, 1, 0], [], []>} : vector<8x4xbf16>, vector<256x4xbf16>, vector<8x256xf32> -> vector<8x256xf32>
    %44 = arith.addf %38, %43 : vector<8x256xf32>
    %45 = vector.extract_strided_slice %1 {offsets = [2, 1, 0], sizes = [16, 16, 4], strides = [1, 1, 1]} : vector<18x18x4xbf16> to vector<16x16x4xbf16>
    %46 = vector.shape_cast %45 : vector<16x16x4xbf16> to vector<256x4xbf16>
    %c7 = arith.constant 7 : index
    %c0_25 = arith.constant 0 : index
    %c0_26 = arith.constant 0 : index
    %47 = vector.load %arg2[%c7, %c0_25, %c0_26] : memref<9x8x4xbf16, #tpu.memory_space<vmem>>, vector<1x8x4xbf16>
    %48 = vector.shape_cast %47 : vector<1x8x4xbf16> to vector<8x4xbf16>
    %cst_27 = arith.constant dense<0.000000e+00> : vector<8x256xf32>
    %49 = tpu.matmul %48, %46, %cst_27 {dimension_numbers = #tpu.dot_dimension_numbers<[1], [1], [0], [0], [0, 0, 1, 0], [], []>} : vector<8x4xbf16>, vector<256x4xbf16>, vector<8x256xf32> -> vector<8x256xf32>
    %50 = arith.addf %44, %49 : vector<8x256xf32>
    %51 = vector.extract_strided_slice %1 {offsets = [2, 2, 0], sizes = [16, 16, 4], strides = [1, 1, 1]} : vector<18x18x4xbf16> to vector<16x16x4xbf16>
    %52 = vector.shape_cast %51 : vector<16x16x4xbf16> to vector<256x4xbf16>
    %c8 = arith.constant 8 : index
    %c0_28 = arith.constant 0 : index
    %c0_29 = arith.constant 0 : index
    %53 = vector.load %arg2[%c8, %c0_28, %c0_29] : memref<9x8x4xbf16, #tpu.memory_space<vmem>>, vector<1x8x4xbf16>
    %54 = vector.shape_cast %53 : vector<1x8x4xbf16> to vector<8x4xbf16>
    %cst_30 = arith.constant dense<0.000000e+00> : vector<8x256xf32>
    %55 = tpu.matmul %54, %52, %cst_30 {dimension_numbers = #tpu.dot_dimension_numbers<[1], [1], [0], [0], [0, 0, 1, 0], [], []>} : vector<8x4xbf16>, vector<256x4xbf16>, vector<8x256xf32> -> vector<8x256xf32>
    %56 = arith.addf %50, %55 : vector<8x256xf32>
    %c0_31 = arith.constant 0 : index
    %c0_32 = arith.constant 0 : index
    %57 = vector.load %arg3[%c0_31, %c0_32] : memref<8x1xf32, #tpu.memory_space<vmem>>, vector<8x1xf32>
    %58 = vector.broadcast %57 : vector<8x1xf32> to vector<8x256xf32>
    %59 = arith.addf %56, %58 : vector<8x256xf32>
    %cst_33 = arith.constant 0.000000e+00 : f32
    %60 = vector.broadcast %cst_33 : f32 to vector<8x256xf32>
    %61 = arith.maximumf %59, %60 : vector<8x256xf32>
    %c0_34 = arith.constant 0 : index
    %c0_35 = arith.constant 0 : index
    %c0_36 = arith.constant 0 : index
    %62 = vector.load %arg4[%c0_34, %c0_35, %c0_36] : memref<1x8x256xf32, #tpu.memory_space<vmem>>, vector<1x8x256xf32>
    %63 = vector.shape_cast %62 : vector<1x8x256xf32> to vector<8x256xf32>
    %64 = vector.shape_cast %61 : vector<8x256xf32> to vector<1x8x256xf32>
    tpu.vector_store %arg4[%c0_34, %c0_35, %c0_36], %64 {strides = array<i32>} : memref<1x8x256xf32, #tpu.memory_space<vmem>>, vector<1x8x256xf32>,
    return
  }
  func.func @transform_0(%arg0: i32) -> (i32, i32, i32, i32) {
    %c0_i32 = arith.constant 0 : i32
    %c0_i32_0 = arith.constant 0 : i32
    %c0_i32_1 = arith.constant 0 : i32
    %c0_i32_2 = arith.constant 0 : i32
    return %arg0, %c0_i32, %c0_i32_0, %c0_i32_1 : i32, i32, i32, i32
  }
  func.func @transform_1(%arg0: i32) -> (i32, i32, i32) {
    %c0_i32 = arith.constant 0 : i32
    %c0_i32_0 = arith.constant 0 : i32
    %c0_i32_1 = arith.constant 0 : i32
    %c0_i32_2 = arith.constant 0 : i32
    return %c0_i32, %c0_i32_0, %c0_i32_1 : i32, i32, i32
  }
  func.func @transform_2(%arg0: i32) -> (i32, i32) {
    %c0_i32 = arith.constant 0 : i32
    %c0_i32_0 = arith.constant 0 : i32
    %c0_i32_1 = arith.constant 0 : i32
    return %c0_i32, %c0_i32_0 : i32, i32
  }
  func.func @transform_3(%arg0: i32) -> (i32, i32, i32) {
    %c0_i32 = arith.constant 0 : i32
    %c0_i32_0 = arith.constant 0 : i32
    %c0_i32_1 = arith.constant 0 : i32
    return %arg0, %c0_i32, %c0_i32_0 : i32, i32, i32
  }
}

</mosaic_0001>

<bundles_post_ra>
// kernel: tpu_custom_call.1
= control target key start
LH: loop header
LB: loop body
LE: loop exit
PB: predicated region body
PF: predicated region fallthrough
CT: control target
= control target key end

     0   :  { %8 = vsyncpa [#allocation3], 0  ;;  %s3176_s0 = inlined_call_operand.vmem [shape: bf16[2,18,18,4], index: 0, kind: input, shape index: {}]   ;;  %s3177_s1 = inlined_call_operand.vmem [shape: bf16[9,8,4], index: 1, kind: input, shape index: {}]   ;;  %s3178_s2 = inlined_call_operand.vmem [shape: f32[8,1], index: 2, kind: input, shape index: {}]   ;;  %s3179_s3 = inlined_call_operand.hbm [shape: f32[2,8,256], index: 3, kind: output, shape index: {}]  }
   0x1   :  { %10 = vsyncpa [#allocation3 + $0x1], 0  ;;  %s2161_s12 = smov 0   ;;  %s2163_s13 = smov 0  }
   0x2   :  { %s2165_s14 = smov 0   ;;  %s2167_s15 = smov 0  }
   0x3 LB: > { %s2182_s16 = sadd.s32 4294967295, %s2137_s15   ;;  %s1680_s17 = sadd.s32 4294967294, %s2137_s15   ;;  %s2137_s15 = sphi %s2167_s15, %s3314_s15   ;;  %s2133_s14 = sphi %s2165_s14, %s3313_s14   ;;  %s2129_s13 = sphi %s2163_s13, %s3312_s13   ;;  %s2125_s12 = sphi %s2161_s12, %s3311_s12  }
   0x4   : > { %s2186_s18 = sadd.s32 1, %s2137_s15   ;;  %s91_s19 = sadd.s32 1, %s2133_s14 }
   0x5   : > { %s88_s20 = ssub.s32 %s2137_s15, %s2186_s18  ;;  %p101_p0 = scmp.ne.s32.totalorder %s2133_s14, %s2129_s13 }
   0x6   : > { %p89_p1 = scmp.eq.s32.totalorder %s88_s20, 0  ;;  %p102_p2 = scmp.eq.s32.totalorder %s2182_s16, 1 }
   0x7   : > { %p107_p3 = scmp.ne.s32.totalorder %s2129_s13, %s2125_s12  ;;  %p108_p4 = scmp.eq.s32.totalorder %s1680_s17, 1 }
   0x8   : > { %s2197_s21 = scalar_select %p89_p1, %s2133_s14, %s91_s19  }
   0x9   : > { %p2199_p5 = por %p102_p2, %p101_p0  ;;  %p2203_p6 = por %p108_p4, %p107_p3 }
   0xa   : > { %p1683_p7 = scmp.ge.s32.totalorder %s2137_s15, 1  ;;  %p140_p8 = scmp.lt.s32.totalorder %s2137_s15, 3 }
   0xc   : > { %p141_p9 = pnand %p1683_p7, %p140_p8 }
   0xe   : > { %144 = sbr.rel (%p141_p9) target bundleno = 607 (0x25f), region = 32 }
  0x15   : > { %p164_p10 = scmp.lt.s32.totalorder %s2182_s16, 1  ;;  %vm662_vm0 = vcmask 31744   ;;  %v2213_v0 = vld [vmem:[%s3177_s1 + $0x4] sm:$0xf]  ;;  %v2218_v1 = vld [vmem:[%s3177_s1] sm:$0xf] }
  0x16   : > { %1797 = vmatprep.mubr.msk.bf16.mxu0 %vm662_vm0, %v2213_v0  ;;  %1815 = vmatprep.mubr.msk.bf16.mxu1 %vm662_vm0, %v2218_v1  ;;  %vm225_vm1 = vsmask.f32 3328  ;;  %vm226_vm2 = vsmask.f32 7440  ;;  %vm943_vm4 = vcmask 1042432   ;;  %vm944_vm5 = vcmask 1046532  }
  0x17   : > { %s165_s28 = scalar_select %p164_p10, %s2182_s16, 1  ;;  %vm2270_vm3 = vmor %vm225_vm1, %vm226_vm2 }
  0x18   : > { %vm2666_vm6 = vmor %vm943_vm4, %vm944_vm5  ;;  %s161_s4 = sand.u32 1, %s2129_s13   ;;  %s1780_s6 = sshll.u32 %s2182_s16, 8 }
  0x19   : > { %s2015_s29 = smul.u32 216, %s165_s28  ;;  %s3134_s11 = scalar_lea.hbm %s3179_s3, %s1780_s6 }
  0x1a   : > { %s1607_s17 = scalar_lea.sflag [#allocation3], %s161_s4  ;;  %s2140_s16 = smov [#allocation2]  }
  0x1b   : > { %s2228_s5 = scalar_lea.vmem %s3176_s0, %s2015_s29  ;;  %s2079_s20 = sshll.u32 %s2140_s16, 4  ;;  %s2080_s20 = int_to_ptr.vmem [resolvable:$false] %s2079_s20 }
  0x1c   : > { %v2231_v2 = vld [vmem:[%s2228_s5 + $0x60] sm:$0xf]  ;;  %v2234_v3 = vld [vmem:[%s2228_s5 + $0x64] sm:$0xf]  ;;  %v2237_v4 = vld [vmem:[%s2228_s5 + $0x68] sm:$0x1] }
  0x1d   : > { %v421_v5 = vshrl.u32 %v2231_v2, 16  ;;  %v424_v6 = vshll.u32 %v2231_v2, 16  ;;  %v430_v7 = vshll.u32 %v2234_v3, 16  ;;  %v434_v8 = vshrl.u32 %v2234_v3, 16  ;;  %v2244_v9 = vld [vmem:[%s2228_s5] sm:$0xf] }
  0x1e   : > { %v440_v10 = vshll.u32 %v2237_v4, 16  ;;  %v2250_v12 = vcombine.low %v2231_v2, %v2234_v3  ;;  %v2253_v13 = vld [vmem:[%s2228_s5 + $0x4] sm:$0xf]  ;;  %v2256_v14 = vld [vmem:[%s2228_s5 + $0x8] sm:$0x1]  ;;  %v229_v20 = vshrl.u32 %v2244_v9, 16 }
  0x1f   : > { %v423_v15 = vrot.slane %v421_v5, 4  ;;  %v426_v16 = vrot.slane %v424_v6, 5  ;;  %v432_v17 = vrot.slane %v430_v7, 5  ;;  %v436_v18 = vrot.slane %v434_v8, 4  ;;  %v2266_v27 = vld [vmem:[%s2228_s5 + $0x6c] sm:$0xf] }
  0x20   : > { %3235 = vst [vmem:[#allocation5_spill] sm:$0xff] %v2250_v12  ;;  %v442_v19 = vrot.slane %v440_v10, 5  ;;  %1951 = vmatprep.subr.msk.bf16.mxu1 %vm662_vm0, %v2250_v12  ;;  %v232_v21 = vshll.u32 %v2244_v9, 16  ;;  %v238_v22 = vshll.u32 %v2253_v13, 16  ;;  %v242_v25 = vshrl.u32 %v2253_v13, 16  ;;  %s2081_s24 = scalar_lea.vmem %s2080_s20, 512 }
  0x21   : > { %v427_v23 = vor.u32 %v426_v16, %v423_v15  ;;  %v437_v24 = vor.u32 %v436_v18, %v432_v17  ;;  %v248_v26 = vshll.u32 %v2256_v14, 16  ;;  %v231_v29 = vrot.slane %v229_v20, 4  ;;  %v2276_v33 = vld [vmem:[%s2228_s5 + $0x70] sm:$0xf]  ;;  %v2287_v45 = vld [vmem:[%s2228_s5 + $0x74] sm:$0x1] }
  0x22   : > { %v234_v30 = vrot.slane %v232_v21, 5  ;;  %v240_v31 = vrot.slane %v238_v22, 5  ;;  %v244_v36 = vrot.slane %v242_v25, 4  ;;  %v1704_v39 = vcombine.low %v2244_v9, %v2253_v13  ;;  %v2291_v47 = vld [vmem:[%s2228_s5 + $0xc] sm:$0xf] }
  0x23   : > { %v428_v34 = vrot.slane %v427_v23, 4  ;;  %v438_v35 = vrot.slane %v437_v24, 4  ;;  %v250_v37 = vrot.slane %v248_v26, 5  ;;  %v445_v40 = vshrl.u32 %v2266_v27, 16  ;;  %v2298_v56 = vld [vmem:[%s2228_s5 + $0x10] sm:$0xf] }
  0x24   : > { %v235_v38 = vor.u32 %v234_v30, %v231_v29  ;;  %v448_v41 = vshll.u32 %v2266_v27, 16  ;;  %v245_v44 = vor.u32 %v244_v36, %v240_v31  ;;  %v454_v46 = vshll.u32 %v2276_v33, 16  ;;  %v2313_v5 = vld [vmem:[%s2228_s5 + $0x14] sm:$0x1]  ;;  %v2321_v20 = vld [vmem:[%s2228_s5 + $0x78] sm:$0xf] }
  0x25   : > { %v433_v42 = vsel %vm2270_vm3, %v428_v34, %v432_v17  ;;  %v443_v43 = vsel %vm2270_vm3, %v438_v35, %v442_v19  ;;  %v839_v50 = vsel %vm662_vm0, %v1704_v39, 0  ;;  %v447_v51 = vrot.slane %v445_v40, 4  ;;  %v2328_v25 = vld [vmem:[%s2228_s5 + $0x7c] sm:$0xf]  ;;  %v2336_v36 = vld [vmem:[%s2228_s5 + $0x80] sm:$0x1] }
  0x26   : > { %v2293_v48 = vcombine.low %v433_v42, %v443_v43  ;;  %v236_v49 = vrot.slane %v235_v38, 4  ;;  %v246_v52 = vrot.slane %v245_v44, 4  ;;  %1800 = vmatpush3.bf16.xpose.msra.mxu1 %v839_v50  ;;  %v450_v53 = vrot.slane %v448_v41, 5  ;;  %v2345_v43 = vld [vmem:[%s2228_s5 + $0x18] sm:$0xf] }
  0x27   : > { %v456_v54 = vrot.slane %v454_v46, 5  ;;  %v458_v55 = vshrl.u32 %v2276_v33, 16  ;;  %v464_v58 = vshll.u32 %v2287_v45, 16  ;;  %v2307_v59 = vcombine.low %v2266_v27, %v2276_v33  ;;  %v2486_v11 = vld [vmem:[%s2228_s5 + $0x9c] sm:$0xf] }
  0x28   : > { %3238 = vst [vmem:[#allocation6_spill] sm:$0xff] %v2293_v48  ;;  %1943 = vmatprep.subr.msk.bf16.mxu0 %vm662_vm0, %v2293_v48  ;;  %v241_v57 = vsel %vm2270_vm3, %v236_v49, %v240_v31  ;;  %v253_v60 = vshrl.u32 %v2291_v47, 16  ;;  %v251_v61 = vsel %vm2270_vm3, %v246_v52, %v250_v37  ;;  %v451_v62 = vor.u32 %v450_v53, %v447_v51  ;;  %v2351_v51 = vld [vmem:[%s2228_s5 + $0x1c] sm:$0xf] }
  0x29   : > { %v460_v63 = vrot.slane %v458_v55, 4  ;;  %v256_v6 = vshll.u32 %v2291_v47, 16  ;;  %v1687_v7 = vcombine.low %v241_v57, %v251_v61  ;;  %v466_v8 = vrot.slane %v464_v58, 5  ;;  %1952 = vmatprep.subr.msk.bf16.mxu1 %vm662_vm0, %v2307_v59  ;;  %v2363_v61 = vld [vmem:[%s2228_s5 + $0x20] sm:$0x1] }
  0x2a   : > { %v255_v10 = vrot.slane %v253_v60, 4  ;;  %v262_v15 = vshll.u32 %v2298_v56, 16  ;;  %v452_v16 = vrot.slane %v451_v62, 4  ;;  %v266_v19 = vshrl.u32 %v2298_v56, 16 }
  0x2b   : > { %v461_v17 = vor.u32 %v460_v63, %v456_v54  ;;  %v258_v18 = vrot.slane %v256_v6, 5  ;;  %v667_v21 = vsel %vm662_vm0, %v1687_v7, 0  ;;  %v272_v23 = vshll.u32 %v2313_v5, 16 }
  0x2c   : > { %v264_v22 = vrot.slane %v262_v15, 5  ;;  %v1705_v24 = vcombine.low %v2291_v47, %v2298_v56  ;;  %1782 = vmatpush3.bf16.xpose.msra.mxu0 %v667_v21  ;;  %v457_v26 = vsel %vm2270_vm3, %v452_v16, %v456_v54  ;;  %v268_v31 = vrot.slane %v266_v19, 4 }
  0x2d   : > { %v462_v29 = vrot.slane %v461_v17, 4  ;;  %v259_v30 = vor.u32 %v258_v18, %v255_v10  ;;  %v274_v34 = vrot.slane %v272_v23, 5  ;;  %v469_v37 = vshrl.u32 %v2321_v20, 16  ;;  %v2373_v18 = vld [vmem:[%s2228_s5 + $0x84] sm:$0xf] }
  0x2e   : > { %v2333_v35 = vsel %vm662_vm0, %v1705_v24, 0  ;;  %v472_v38 = vshll.u32 %v2321_v20, 16  ;;  %v269_v41 = vor.u32 %v268_v31, %v264_v22  ;;  %v478_v42 = vshll.u32 %v2328_v25, 16  ;;  %v2378_v24 = vld [vmem:[%s2228_s5 + $0x88] sm:$0xf] }
  0x2f   : > { %v467_v39 = vsel %vm2270_vm3, %v462_v29, %v466_v8  ;;  %v260_v40 = vrot.slane %v259_v30, 4  ;;  %1802 = vmatpush3.bf16.xpose.msra.mxu1 %v2333_v35  ;;  %v471_v46 = vrot.slane %v469_v37, 4  ;;  %v482_v50 = vshrl.u32 %v2328_v25, 16 }
  0x30   : > { %v2347_v44 = vcombine.low %v457_v26, %v467_v39  ;;  %v474_v49 = vrot.slane %v472_v38, 5  ;;  %v270_v53 = vrot.slane %v269_v41, 4  ;;  %v480_v54 = vrot.slane %v478_v42, 5  ;;  %v2389_v39 = vld [vmem:[%s2228_s5 + $0x8c] sm:$0x1] }
  0x31   : > { %v265_v52 = vsel %vm2270_vm3, %v260_v40, %v264_v22  ;;  %v488_v55 = vshll.u32 %v2336_v36, 16  ;;  %v484_v58 = vrot.slane %v482_v50, 4  ;;  %v2360_v60 = vcombine.low %v2321_v20, %v2328_v25  ;;  %v2400_v50 = vld [vmem:[%s2228_s5 + $0x24] sm:$0xf] }
  0x32   : > { %3239 = vst [vmem:[#allocation7_spill] sm:$0xff] %v2347_v44  ;;  %1944 = vmatprep.subr.msk.bf16.mxu0 %vm662_vm0, %v2347_v44  ;;  %v475_v57 = vor.u32 %v474_v49, %v471_v46  ;;  %v277_v62 = vshrl.u32 %v2345_v43, 16  ;;  %v275_v63 = vsel %vm2270_vm3, %v270_v53, %v274_v34  ;;  %v280_v7 = vshll.u32 %v2345_v43, 16 }
  0x33   : > { %v490_v6 = vrot.slane %v488_v55, 5  ;;  %v286_v8 = vshll.u32 %v2351_v51, 16  ;;  %v1688_v10 = vcombine.low %v265_v52, %v275_v63  ;;  %v485_v16 = vor.u32 %v484_v58, %v480_v54  ;;  %1953 = vmatprep.subr.msk.bf16.mxu1 %vm662_vm0, %v2360_v60 }
  0x34   : > { %v476_v15 = vrot.slane %v475_v57, 4  ;;  %v279_v17 = vrot.slane %v277_v62, 4  ;;  %v282_v19 = vrot.slane %v280_v7, 5  ;;  %v290_v22 = vshrl.u32 %v2351_v51, 16 }
  0x35   : > { %v288_v21 = vrot.slane %v286_v8, 5  ;;  %v296_v23 = vshll.u32 %v2363_v61, 16  ;;  %v2381_v26 = vsel %vm662_vm0, %v1688_v10, 0  ;;  %v486_v30 = vrot.slane %v485_v16, 4 }
  0x36   : > { %3240 = vst [vmem:[#allocation8_spill] sm:$0xff] %v2381_v26  ;;  %v481_v29 = vsel %vm2270_vm3, %v476_v15, %v480_v54  ;;  %v1706_v31 = vcombine.low %v2345_v43, %v2351_v51  ;;  %1784 = vmatpush3.bf16.xpose.msra.mxu0 %v2381_v26  ;;  %v283_v34 = vor.u32 %v282_v19, %v279_v17  ;;  %v292_v37 = vrot.slane %v290_v22, 4  ;;  %v2420_v22 = vld [vmem:[%s2228_s5 + $0x2c] sm:$0x1]  ;;  %v2511_v26 = vld [vmem:[%s2228_s5 + $0x3c] sm:$0xf] }
  0x37   : > { %v298_v38 = vrot.slane %v296_v23, 5  ;;  %v493_v40 = vshrl.u32 %v2373_v18, 16  ;;  %v491_v41 = vsel %vm2270_vm3, %v486_v30, %v490_v6  ;;  %v496_v46 = vshll.u32 %v2373_v18, 16  ;;  %v2408_v6 = vld [vmem:[%s2228_s5 + $0x28] sm:$0xf]  ;;  %3250 = vst [vmem:[#allocation18_spill] sm:$0xff] %v2511_v26 }
  0x38   : > { %v2395_v42 = vsel %vm662_vm0, %v1706_v31, 0  ;;  %v502_v49 = vshll.u32 %v2378_v24, 16  ;;  %v2402_v52 = vcombine.low %v481_v29, %v491_v41  ;;  %v284_v53 = vrot.slane %v283_v34, 4 }
  0x39   : > { %v293_v54 = vor.u32 %v292_v37, %v288_v21  ;;  %1804 = vmatpush3.bf16.xpose.msra.mxu1 %v2395_v42  ;;  %v495_v55 = vrot.slane %v493_v40, 4  ;;  %v498_v57 = vrot.slane %v496_v46, 5  ;;  %v506_v62 = vshrl.u32 %v2378_v24, 16  ;;  %v2430_v46 = vld [vmem:[%s2228_s5 + $0x90] sm:$0xf] }
  0x3a   : > { %3241 = vst [vmem:[#allocation9_spill] sm:$0xff] %v2402_v52  ;;  %v504_v58 = vrot.slane %v502_v49, 5  ;;  %v512_v63 = vshll.u32 %v2389_v39, 16  ;;  %1945 = vmatprep.subr.msk.bf16.mxu0 %vm662_vm0, %v2402_v52  ;;  %v289_v7 = vsel %vm2270_vm3, %v284_v53, %v288_v21  ;;  %v2416_v10 = vcombine.low %v2373_v18, %v2378_v24 }
  0x3b   : > { %v294_v8 = vrot.slane %v293_v54, 4  ;;  %v301_v15 = vshrl.u32 %v2400_v50, 16  ;;  %v499_v16 = vor.u32 %v498_v57, %v495_v55  ;;  %v508_v17 = vrot.slane %v506_v62, 4  ;;  %v2436_v55 = vld [vmem:[%s2228_s5 + $0x94] sm:$0xf] }
  0x3c   : > { %v514_v19 = vrot.slane %v512_v63, 5  ;;  %v304_v23 = vshll.u32 %v2400_v50, 16  ;;  %1954 = vmatprep.subr.msk.bf16.mxu1 %vm662_vm0, %v2416_v10  ;;  %v310_v30 = vshll.u32 %v2408_v6, 16  ;;  %v314_v31 = vshrl.u32 %v2408_v6, 16 }
  0x3d   : > { %v299_v29 = vsel %vm2270_vm3, %v294_v8, %v298_v38  ;;  %v303_v21 = vrot.slane %v301_v15, 4  ;;  %v500_v37 = vrot.slane %v499_v16, 4  ;;  %v509_v40 = vor.u32 %v508_v17, %v504_v58  ;;  %v2448_v17 = vld [vmem:[%s2228_s5 + $0x98] sm:$0x1] }
  0x3e   : > { %v1689_v34 = vcombine.low %v289_v7, %v299_v29  ;;  %v306_v41 = vrot.slane %v304_v23, 5  ;;  %v312_v49 = vrot.slane %v310_v30, 5  ;;  %v316_v53 = vrot.slane %v314_v31, 4  ;;  %v2457_v31 = vld [vmem:[%s2228_s5 + $0x30] sm:$0xf] }
  0x3f   : > { %v320_v54 = vshll.u32 %v2420_v22, 16  ;;  %v1707_v38 = vcombine.low %v2400_v50, %v2408_v6  ;;  %v505_v62 = vsel %vm2270_vm3, %v500_v37, %v504_v58  ;;  %v510_v63 = vrot.slane %v509_v40, 4 }
  0x40   : > { %v2439_v57 = vsel %vm662_vm0, %v1689_v34, 0  ;;  %v307_v7 = vor.u32 %v306_v41, %v303_v21  ;;  %v317_v8 = vor.u32 %v316_v53, %v312_v49  ;;  %v517_v23 = vshrl.u32 %v2430_v46, 16 }
  0x41   : > { %3242 = vst [vmem:[#allocation10_spill] sm:$0xff] %v2439_v57  ;;  %1786 = vmatpush3.bf16.xpose.msra.mxu0 %v2439_v57  ;;  %v322_v15 = vrot.slane %v320_v54, 5  ;;  %v2445_v16 = vsel %vm662_vm0, %v1707_v38, 0  ;;  %v515_v29 = vsel %vm2270_vm3, %v510_v63, %v514_v19  ;;  %v520_v58 = vshll.u32 %v2430_v46, 16  ;;  %v2466_v63 = vld [vmem:[%s2228_s5 + $0x34] sm:$0xf] }
  0x42   : > { %3243 = vst [vmem:[#allocation11_spill] sm:$0xff] %v2445_v16  ;;  %v308_v30 = vrot.slane %v307_v7, 4  ;;  %1806 = vmatpush3.bf16.xpose.msra.mxu1 %v2445_v16  ;;  %v526_v21 = vshll.u32 %v2436_v55, 16  ;;  %v2459_v34 = vcombine.low %v505_v62, %v515_v29  ;;  %v318_v37 = vrot.slane %v317_v8, 4 }
  0x43   : > { %v519_v40 = vrot.slane %v517_v23, 4  ;;  %v530_v41 = vshrl.u32 %v2436_v55, 16  ;;  %v522_v19 = vrot.slane %v520_v58, 5  ;;  %v536_v38 = vshll.u32 %v2448_v17, 16  ;;  %v2477_v23 = vld [vmem:[%s2228_s5 + $0x38] sm:$0x1] }
  0x44   : > { %3244 = vst [vmem:[#allocation12_spill] sm:$0xff] %v2459_v34  ;;  %v313_v53 = vsel %vm2270_vm3, %v308_v30, %v312_v49  ;;  %v528_v54 = vrot.slane %v526_v21, 5  ;;  %1946 = vmatprep.subr.msk.bf16.mxu0 %vm662_vm0, %v2459_v34  ;;  %v323_v62 = vsel %vm2270_vm3, %v318_v37, %v322_v15  ;;  %v2474_v8 = vcombine.low %v2430_v46, %v2436_v55  ;;  %v2496_v34 = vld [vmem:[%s2228_s5 + $0xa0] sm:$0xf] }
  0x45   : > { %v532_v7 = vrot.slane %v530_v41, 4  ;;  %v325_v49 = vshrl.u32 %v2457_v31, 16  ;;  %v1690_v29 = vcombine.low %v313_v53, %v323_v62  ;;  %v523_v30 = vor.u32 %v522_v19, %v519_v40  ;;  %3247 = vst [vmem:[#allocation15_spill] sm:$0xff] %v2496_v34 }
  0x46   : > { %3245 = vst [vmem:[#allocation13_spill] sm:$0xff] %v2474_v8  ;;  %v538_v58 = vrot.slane %v536_v38, 5  ;;  %v328_v21 = vshll.u32 %v2457_v31, 16  ;;  %1955 = vmatprep.subr.msk.bf16.mxu1 %vm662_vm0, %v2474_v8  ;;  %v334_v37 = vshll.u32 %v2466_v63, 16  ;;  %v338_v41 = vshrl.u32 %v2466_v63, 16 }
  0x47   : > { %v533_v32 = vor.u32 %v532_v7, %v528_v54  ;;  %v327_v15 = vrot.slane %v325_v49, 4  ;;  %v2489_v48 = vsel %vm662_vm0, %v1690_v29, 0  ;;  %v524_v40 = vrot.slane %v523_v30, 4  ;;  %v2501_v30 = vld [vmem:[%s2228_s5 + $0xa4] sm:$0x1] }
  0x48   : > { %3246 = vst [vmem:[#allocation14_spill] sm:$0xff] %v2489_v48  ;;  %v330_v53 = vrot.slane %v328_v21, 5  ;;  %v344_v19 = vshll.u32 %v2477_v23, 16  ;;  %v336_v62 = vrot.slane %v334_v37, 5  ;;  %v340_v7 = vrot.slane %v338_v41, 4  ;;  %3248 = vst [vmem:[#allocation16_spill] sm:$0xff] %v2501_v30 }
  0x49   : > { %1788 = vmatpush3.bf16.xpose.msra.mxu0 %v2489_v48  ;;  %v534_v38 = vrot.slane %v533_v32, 4  ;;  %v1708_v49 = vcombine.low %v2457_v31, %v2466_v63  ;;  %v529_v57 = vsel %vm2270_vm3, %v524_v40, %v528_v54  ;;  %v541_v21 = vshrl.u32 %v2486_v11, 16 }
  0x4a   : > { %v331_v29 = vor.u32 %v330_v53, %v327_v15  ;;  %v346_v52 = vrot.slane %v344_v19, 5  ;;  %v341_v37 = vor.u32 %v340_v7, %v336_v62  ;;  %v544_v48 = vshll.u32 %v2486_v11, 16  ;;  %v2520_v7 = vld [vmem:[%s2228_s5 + $0x40] sm:$0xf] }
  0x4b   : > { %v539_v32 = vsel %vm2270_vm3, %v534_v38, %v538_v58  ;;  %v2507_v41 = vsel %vm662_vm0, %v1708_v49, 0  ;;  %v543_v40 = vrot.slane %v541_v21, 4  ;;  %v550_v53 = vshll.u32 %v2496_v34, 16  ;;  %3252 = vst [vmem:[#allocation20_spill] sm:$0xff] %v2520_v7  ;;  %v2531_v21 = vld [vmem:[%s2228_s5 + $0x44] sm:$0x1] }
  0x4c   : > { %3249 = vst [vmem:[#allocation17_spill] sm:$0xff] %v2507_v41  ;;  %v2513_v54 = vcombine.low %v529_v57, %v539_v32  ;;  %v332_v15 = vrot.slane %v331_v29, 4  ;;  %1808 = vmatpush3.bf16.xpose.msra.mxu1 %v2507_v41  ;;  %v342_v19 = vrot.slane %v341_v37, 4  ;;  %v546_v44 = vrot.slane %v544_v48, 5  ;;  %3254 = vst [vmem:[#allocation22_spill] sm:$0xff] %v2531_v21 }
  0x4d   : > { %v554_v58 = vshrl.u32 %v2496_v34, 16  ;;  %v560_v38 = vshll.u32 %v2501_v30, 16  ;;  %v552_v49 = vrot.slane %v550_v53, 5  ;;  %v2528_v29 = vcombine.low %v2486_v11, %v2496_v34 }
  0x4e   : > { %3251 = vst [vmem:[#allocation19_spill] sm:$0xff] %v2513_v54  ;;  %1947 = vmatprep.subr.msk.bf16.mxu0 %vm662_vm0, %v2513_v54  ;;  %v337_v57 = vsel %vm2270_vm3, %v332_v15, %v336_v62  ;;  %v349_v48 = vshrl.u32 %v2511_v26, 16  ;;  %v347_v32 = vsel %vm2270_vm3, %v342_v19, %v346_v52  ;;  %v547_v37 = vor.u32 %v546_v44, %v543_v40  ;;  %v2543_v44 = vld [vmem:[%s2228_s5 + $0xa8] sm:$0xf] }
  0x4f   : > { %3253 = vst [vmem:[#allocation21_spill] sm:$0xff] %v2528_v29  ;;  %v556_v12 = vrot.slane %v554_v58, 4  ;;  %v562_v54 = vrot.slane %v560_v38, 5  ;;  %v1691_v41 = vcombine.low %v337_v57, %v347_v32  ;;  %1956 = vmatprep.subr.msk.bf16.mxu1 %vm662_vm0, %v2528_v29  ;;  %v352_v15 = vshll.u32 %v2511_v26, 16  ;;  %3255 = vst [vmem:[#allocation23_spill] sm:$0xff] %v2543_v44 }
  0x50   : > { %v351_v62 = vrot.slane %v349_v48, 4  ;;  %v358_v53 = vshll.u32 %v2520_v7, 16  ;;  %v548_v8 = vrot.slane %v547_v37, 4  ;;  %v362_v30 = vshrl.u32 %v2520_v7, 16  ;;  %v2551_v57 = vld [vmem:[%s2228_s5 + $0xac] sm:$0xf] }
  0x51   : > { %v557_v16 = vor.u32 %v556_v12, %v552_v49  ;;  %v368_v52 = vshll.u32 %v2531_v21, 16  ;;  %v2546_v40 = vsel %vm662_vm0, %v1691_v41, 0  ;;  %v354_v19 = vrot.slane %v352_v15, 5  ;;  %3257 = vst [vmem:[#allocation25_spill] sm:$0xff] %v2551_v57  ;;  %v2560_v15 = vld [vmem:[%s2228_s5 + $0xb0] sm:$0x1] }
  0x52   : > { %3256 = vst [vmem:[#allocation24_spill] sm:$0xff] %v2546_v40  ;;  %v360_v58 = vrot.slane %v358_v53, 5  ;;  %v1709_v38 = vcombine.low %v2511_v26, %v2520_v7  ;;  %1790 = vmatpush3.bf16.xpose.msra.mxu0 %v2546_v40  ;;  %v553_v12 = vsel %vm2270_vm3, %v548_v8, %v552_v49  ;;  %v364_v32 = vrot.slane %v362_v30, 4  ;;  %3259 = vst [vmem:[#allocation27_spill] sm:$0xff] %v2560_v15  ;;  %v2570_v30 = vld [vmem:[%s2228_s5 + $0x48] sm:$0xf] }
  0x53   : > { %v558_v48 = vrot.slane %v557_v16, 4  ;;  %v370_v37 = vrot.slane %v368_v52, 5  ;;  %v355_v29 = vor.u32 %v354_v19, %v351_v62  ;;  %v565_v53 = vshrl.u32 %v2543_v44, 16  ;;  %3260 = vst [vmem:[#allocation28_spill] sm:$0xff] %v2570_v30 }
  0x54   : > { %v2557_v41 = vsel %vm662_vm0, %v1709_v38, 0  ;;  %v568_v21 = vshll.u32 %v2543_v44, 16  ;;  %v365_v7 = vor.u32 %v364_v32, %v360_v58  ;;  %v574_v16 = vshll.u32 %v2551_v57, 16 }
  0x55   : > { %3258 = vst [vmem:[#allocation26_spill] sm:$0xff] %v2557_v41  ;;  %v563_v40 = vsel %vm2270_vm3, %v558_v48, %v562_v54  ;;  %1810 = vmatpush3.bf16.xpose.msra.mxu1 %v2557_v41  ;;  %v578_v8 = vshrl.u32 %v2551_v57, 16  ;;  %v356_v62 = vrot.slane %v355_v29, 4  ;;  %v567_v52 = vrot.slane %v565_v53, 4  ;;  %v2576_v48 = vld [vmem:[%s2228_s5 + $0x4c] sm:$0xf] }
  0x56   : > { %v2572_v49 = vcombine.low %v553_v12, %v563_v40  ;;  %v570_v19 = vrot.slane %v568_v21, 5  ;;  %v366_v38 = vrot.slane %v365_v7, 4  ;;  %v576_v26 = vrot.slane %v574_v16, 5  ;;  %3262 = vst [vmem:[#allocation30_spill] sm:$0xff] %v2576_v48  ;;  %v2587_v29 = vld [vmem:[%s2228_s5 + $0x50] sm:$0x1] }
  0x57   : > { %v580_v34 = vrot.slane %v578_v8, 4  ;;  %v584_v54 = vshll.u32 %v2560_v15, 16  ;;  %v361_v32 = vsel %vm2270_vm3, %v356_v62, %v360_v58  ;;  %v2584_v40 = vcombine.low %v2543_v44, %v2551_v57  ;;  %3264 = vst [vmem:[#allocation32_spill] sm:$0xff] %v2587_v29 }
  0x58   : > { %3261 = vst [vmem:[#allocation29_spill] sm:$0xff] %v2572_v49  ;;  %1948 = vmatprep.subr.msk.bf16.mxu0 %vm662_vm0, %v2572_v49  ;;  %v571_v41 = vor.u32 %v570_v19, %v567_v52  ;;  %v373_v7 = vshrl.u32 %v2570_v30, 16  ;;  %v371_v21 = vsel %vm2270_vm3, %v366_v38, %v370_v37  ;;  %v376_v16 = vshll.u32 %v2570_v30, 16 }
  0x59   : > { %3263 = vst [vmem:[#allocation31_spill] sm:$0xff] %v2584_v40  ;;  %v581_v12 = vor.u32 %v580_v34, %v576_v26  ;;  %v586_v53 = vrot.slane %v584_v54, 5  ;;  %v1692_v8 = vcombine.low %v361_v32, %v371_v21  ;;  %1957 = vmatprep.subr.msk.bf16.mxu1 %vm662_vm0, %v2584_v40  ;;  %v382_v52 = vshll.u32 %v2576_v48, 16  ;;  %v2599_v34 = vld [vmem:[%s2228_s5 + $0xb4] sm:$0xf] }
  0x5a   : > { %v572_v58 = vrot.slane %v571_v41, 4  ;;  %v375_v62 = vrot.slane %v373_v7, 4  ;;  %v378_v49 = vrot.slane %v376_v16, 5  ;;  %v386_v15 = vshrl.u32 %v2576_v48, 16  ;;  %3265 = vst [vmem:[#allocation33_spill] sm:$0xff] %v2599_v34 }
  0x5b   : > { %v582_v19 = vrot.slane %v581_v12, 4  ;;  %v392_v37 = vshll.u32 %v2587_v29, 16  ;;  %v2602_v38 = vsel %vm662_vm0, %v1692_v8, 0  ;;  %v384_v54 = vrot.slane %v382_v52, 5  ;;  %v2609_v7 = vld [vmem:[%s2228_s5 + $0xb8] sm:$0xf] }
  0x5c   : > { %3266 = vst [vmem:[#allocation34_spill] sm:$0xff] %v2602_v38  ;;  %v577_v41 = vsel %vm2270_vm3, %v572_v58, %v576_v26  ;;  %v1710_v32 = vcombine.low %v2570_v30, %v2576_v48  ;;  %3267 = vst [vmem:[#allocation35_spill] sm:$0xff] %v2609_v7  ;;  %1792 = vmatpush3.bf16.xpose.msra.mxu0 %v2602_v38  ;;  %v379_v12 = vor.u32 %v378_v49, %v375_v62  ;;  %v2615_v40 = vld [vmem:[%s2228_s5 + $0xbc] sm:$0x1] }
  0x5d   : > { %v587_v21 = vsel %vm2270_vm3, %v582_v19, %v586_v53  ;;  %v388_v16 = vrot.slane %v386_v15, 4  ;;  %v394_v8 = vrot.slane %v392_v37, 5  ;;  %3268 = vst [vmem:[#allocation36_spill] sm:$0xff] %v2615_v40  ;;  %v589_v52 = vshrl.u32 %v2599_v34, 16  ;;  %v2628_v53 = vld [vmem:[%s2228_s5 + $0x54] sm:$0xf] }
  0x5e   : > { %v2617_v26 = vcombine.low %v577_v41, %v587_v21  ;;  %v2620_v58 = vsel %vm662_vm0, %v1710_v32, 0  ;;  %v592_v29 = vshll.u32 %v2599_v34, 16  ;;  %v380_v48 = vrot.slane %v379_v12, 4  ;;  %v2638_v32 = vld [vmem:[%s2228_s5 + $0x58] sm:$0xf] }
  0x5f   : > { %3270 = vst [vmem:[#allocation38_spill] sm:$0xff] %v2620_v58  ;;  %v389_v38 = vor.u32 %v388_v16, %v384_v54  ;;  %1812 = vmatpush3.bf16.xpose.msra.mxu1 %v2620_v58  ;;  %v598_v49 = vshll.u32 %v2609_v7, 16  ;;  %v602_v15 = vshrl.u32 %v2609_v7, 16  ;;  %v591_v62 = vrot.slane %v589_v52, 4 }
  0x60   : > { %3269 = vst [vmem:[#allocation37_spill] sm:$0xff] %v2617_v26  ;;  %1949 = vmatprep.subr.msk.bf16.mxu0 %vm662_vm0, %v2617_v26  ;;  %v594_v19 = vrot.slane %v592_v29, 5  ;;  %v608_v37 = vshll.u32 %v2615_v40, 16  ;;  %v2635_v41 = vcombine.low %v2599_v34, %v2609_v7  ;;  %v385_v21 = vsel %vm2270_vm3, %v380_v48, %v384_v54  ;;  %v2645_v29 = vld [vmem:[%s2228_s5 + $0x5c] sm:$0x1] }
  0x61   : > { %v390_v12 = vrot.slane %v389_v38, 4  ;;  %v600_v16 = vrot.slane %v598_v49, 5  ;;  %v604_v58 = vrot.slane %v602_v15, 4  ;;  %v397_v52 = vshrl.u32 %v2628_v53, 16 }
  0x62   : > { %3271 = vst [vmem:[#allocation39_spill] sm:$0xff] %v2635_v41  ;;  %v595_v30 = vor.u32 %v594_v19, %v591_v62  ;;  %v610_v57 = vrot.slane %v608_v37, 5  ;;  %1958 = vmatprep.subr.msk.bf16.mxu1 %vm662_vm0, %v2635_v41  ;;  %v400_v26 = vshll.u32 %v2628_v53, 16  ;;  %v406_v48 = vshll.u32 %v2638_v32, 16 }
  0x63   : > { %v395_v40 = vsel %vm2270_vm3, %v390_v12, %v394_v8  ;;  %v605_v7 = vor.u32 %v604_v58, %v600_v16  ;;  %v410_v38 = vshrl.u32 %v2638_v32, 16  ;;  %v399_v15 = vrot.slane %v397_v52, 4 }
  0x64   : > { %v1693_v54 = vcombine.low %v385_v21, %v395_v40  ;;  %v596_v49 = vrot.slane %v595_v30, 4  ;;  %v402_v62 = vrot.slane %v400_v26, 5  ;;  %v408_v37 = vrot.slane %v406_v48, 5 }
  0x65   : > { %v606_v19 = vrot.slane %v605_v7, 4  ;;  %v412_v41 = vrot.slane %v410_v38, 4  ;;  %v416_v34 = vshll.u32 %v2645_v29, 16  ;;  %v1711_v12 = vcombine.low %v2628_v53, %v2638_v32 }
  0x66   : > { %v2655_v44 = vsel %vm662_vm0, %v1693_v54, 0  ;;  %v601_v8 = vsel %vm2270_vm3, %v596_v49, %v600_v16  ;;  %v403_v58 = vor.u32 %v402_v62, %v399_v15  ;;  %v1729_v21 = vrot.slane %v2231_v2, 9 }
  0x67   : > { %1794 = vmatpush3.bf16.xpose.msra.mxu0 %v2655_v44  ;;  %v611_v30 = vsel %vm2270_vm3, %v606_v19, %v610_v57  ;;  %v413_v40 = vor.u32 %v412_v41, %v408_v37  ;;  %v418_v7 = vrot.slane %v416_v34, 5  ;;  %v2674_v48 = vsel %vm662_vm0, %v1711_v12, 0 }
  0x68   : > { %v2671_v16 = vcombine.low %v601_v8, %v611_v30  ;;  %v404_v52 = vrot.slane %v403_v58, 4  ;;  %v1004_v38 = vrot.slane %v2234_v3, 5  ;;  %1814 = vmatpush3.bf16.xpose.msra.mxu1 %v2674_v48  ;;  %v1721_v57 = vrot.slane %v2244_v9, 9 }
  0x69   : > { %v414_v54 = vrot.slane %v413_v40, 4  ;;  %v948_v34 = vrot.slane %v2253_v13, 5  ;;  %v1730_v41 = vrot.slane %v2266_v27, 9  ;;  %1967 = vmatprep.subr.msk.bf16.mxu1 %vm662_vm0, %v2307_v59  ;;  %v1011_v3 = vrot.slane %v2276_v33, 5 }
  0x6a   : > { %1950 = vmatprep.subr.msk.bf16.mxu0 %vm662_vm0, %v2671_v16  ;;  %v409_v2 = vsel %vm2270_vm3, %v404_v52, %v408_v37  ;;  %v1005_v49 = vsel %vm2666_vm6, %v1729_v21, %v1004_v38  ;;  %v1006_v15 = vrot.slane %v1004_v38, 4  ;;  %v1014_v62 = vrot.slane %v2287_v45, 5 }
  0x6b   : > { %v419_v9 = vsel %vm2270_vm3, %v414_v54, %v418_v7  ;;  %v949_v13 = vsel %vm2666_vm6, %v1721_v57, %v948_v34  ;;  %v950_v27 = vrot.slane %v948_v34, 4  ;;  %v3274_v37 = vrot.slane %v2237_v4, 5 }
  0x6c   : > { %v1694_v19 = vcombine.low %v409_v2, %v419_v9  ;;  %v1012_v58 = vsel %vm2666_vm6, %v1730_v41, %v1011_v3  ;;  %v1013_v12 = vrot.slane %v1011_v3, 4  ;;  %v3275_v30 = vrot.slane %v2256_v14, 5  ;;  %v2718_v14 = vld [vmem:[%s3177_s1 + $0xc] sm:$0xf] }
  0x6d   : > { %v1008_v8 = vsel %vm2666_vm6, %v1006_v15, %v3274_v37  ;;  %v1722_v7 = vrot.slane %v2291_v47, 9  ;;  %v955_v45 = vrot.slane %v2298_v56, 5  ;;  %v958_v38 = vrot.slane %v2313_v5, 5 }
  0x6e   : > { %v2701_v33 = vcombine.low %v1005_v49, %v1008_v8  ;;  %v952_v40 = vsel %vm2666_vm6, %v950_v27, %v3275_v30  ;;  %v2710_v4 = vsel %vm662_vm0, %v1694_v19, 0  ;;  %v1015_v52 = vsel %vm2666_vm6, %v1013_v12, %v1014_v62 }
  0x6f   : > { %v1738_v21 = vcombine.low %v949_v13, %v952_v40  ;;  %1796 = vmatpush3.bf16.xpose.msra.mxu0 %v2710_v4  ;;  %v956_v47 = vsel %vm2666_vm6, %v1722_v7, %v955_v45  ;;  %v957_v56 = vrot.slane %v955_v45, 4  ;;  %1816 = vmatmul.mubr.msk.bf16.vlgmr.msra.gmra.mrb[0].mxu1 %vm662_vm0, %v2218_v1  ;;  %v2727_v54 = vcombine.low %v1012_v58, %v1015_v52 }
  0x70   : > { %1959 = vmatprep.subr.msk.bf16.mxu0 %vm662_vm0, %v2701_v33  ;;  %v1731_v5 = vrot.slane %v2321_v20, 9  ;;  %v1018_v57 = vrot.slane %v2328_v25, 5  ;;  %v1723_v34 = vrot.slane %v2345_v43, 9  ;;  %1836 = vmatpush3.bf16.xpose.msra.mxu1 %v2333_v35  ;;  %v962_v2 = vrot.slane %v2351_v51, 5 }
  0x71   : > { %v959_v41 = vsel %vm2666_vm6, %v957_v56, %v958_v38  ;;  %v965_v1 = vrot.slane %v2363_v61, 5  ;;  %v1732_v49 = vrot.slane %v2373_v18, 9  ;;  %1851 = vmatprep.mubr.msk.bf16.mxu1 %vm662_vm0, %v2718_v14  ;;  %v1112_v20 = vsel %vm662_vm0, %v1738_v21, 0  ;;  %1968 = vmatprep.subr.msk.bf16.mxu1 %vm662_vm0, %v2360_v60  ;;  %v3276_v38 = vld [vmem:[#allocation15_spill] sm:$0xff]  ;;  %v3277_v56 = vld [vmem:[#allocation16_spill] sm:$0xff] }
  0x72   : > { %v1739_v15 = vcombine.low %v956_v47, %v959_v41  ;;  %v1021_v25 = vrot.slane %v2336_v36, 5  ;;  %v1025_v35 = vrot.slane %v2378_v24, 5  ;;  %v2747_v43 = vsel %vm2666_vm6, %v1723_v34, %v962_v2  ;;  %v2758_v36 = vld [vmem:[%s3177_s1 + $0x8] sm:$0xf] }
  0x73   : > { %v964_v51 = vrot.slane %v962_v2, 4  ;;  %v1028_v61 = vrot.slane %v2389_v39, 5  ;;  %v1724_v18 = vrot.slane %v2400_v50, 9  ;;  %v1019_v3 = vsel %vm2666_vm6, %v1731_v5, %v1018_v57 }
  0x74   : > { %v1020_v9 = vrot.slane %v1018_v57, 4  ;;  %v1026_v13 = vsel %vm2666_vm6, %v1732_v49, %v1025_v35  ;;  %v1027_v27 = vrot.slane %v1025_v35, 4  ;;  %v2761_v24 = vsel %vm662_vm0, %v1739_v15, 0  ;;  %v3279_v49 = vld [vmem:[#allocation20_spill] sm:$0xff] }
  0x75   : > { %v2765_v39 = vsel %vm2666_vm6, %v964_v51, %v965_v1  ;;  %v969_v50 = vrot.slane %v2408_v6, 5  ;;  %v972_v62 = vrot.slane %v2420_v22, 5  ;;  %v1733_v8 = vrot.slane %v2430_v46, 9 }
  0x76   : > { %1798 = vmatmul.mubr.msk.bf16.vlgmr.msra.gmra.mrb[0].mxu0 %vm662_vm0, %v2213_v0  ;;  %v1740_v19 = vcombine.low %v2747_v43, %v2765_v39  ;;  %v1029_v37 = vsel %vm2666_vm6, %v1027_v27, %v1028_v61  ;;  %v1032_v58 = vrot.slane %v2436_v55, 5  ;;  %v1035_v0 = vrot.slane %v2448_v17, 5  ;;  %v3281_v43 = vld [vmem:[#allocation23_spill] sm:$0xff]  ;;  %v3282_v61 = vld [vmem:[#allocation25_spill] sm:$0xff] }
  0x77   : > { %1818 = vmatpush3.bf16.xpose.msra.mxu0 %v1112_v20  ;;  %v2777_v12 = vcombine.low %v1026_v13, %v1029_v37  ;;  %v2781_v6 = vsel %vm2666_vm6, %v1724_v18, %v969_v50  ;;  %v971_v22 = vrot.slane %v969_v50, 4  ;;  %1833 = vmatprep.mubr.msk.bf16.mxu0 %vm662_vm0, %v2758_v36  ;;  %v1022_v46 = vsel %vm2666_vm6, %v1020_v9, %v1021_v25  ;;  %v3280_v25 = vld [vmem:[#allocation22_spill] sm:$0xff]  ;;  %v3283_v37 = vld [vmem:[#allocation27_spill] sm:$0xff] }
  0x78   : > { %1960 = vmatprep.subr.msk.bf16.mxu0 %vm662_vm0, %v2727_v54  ;;  %v1033_v55 = vsel %vm2666_vm6, %v1733_v8, %v1032_v58  ;;  %v1034_v30 = vrot.slane %v1032_v58, 4  ;;  %v1725_v40 = vrot.slane %v2457_v31, 9  ;;  %1838 = vmatpush3.bf16.xpose.msra.mxu1 %v2395_v42  ;;  %v976_v7 = vrot.slane %v2466_v63, 5 }
  0x79   : > { %v2796_v17 = vsel %vm2666_vm6, %v971_v22, %v972_v62  ;;  %v979_v45 = vrot.slane %v2477_v23, 5  ;;  %v1734_v21 = vrot.slane %v2486_v11, 9  ;;  %1969 = vmatprep.subr.msk.bf16.mxu1 %vm662_vm0, %v2416_v10  ;;  %v1039_v47 = vrot.slane %v3276_v38, 5  ;;  %v3278_v11 = vld [vmem:[#allocation18_spill] sm:$0xff] }
  0x7a   : > { %v1741_v52 = vcombine.low %v2781_v6, %v2796_v17  ;;  %v1036_v31 = vsel %vm2666_vm6, %v1034_v30, %v1035_v0  ;;  %v1042_v5 = vrot.slane %v3277_v56, 5  ;;  %v977_v63 = vsel %vm2666_vm6, %v1725_v40, %v976_v7  ;;  %v3284_v6 = vld [vmem:[#allocation28_spill] sm:$0xff]  ;;  %v3285_v0 = vld [vmem:[#allocation30_spill] sm:$0xff] }
  0x7b   : > { %v2809_v57 = vcombine.low %v1033_v55, %v1036_v31  ;;  %v978_v23 = vrot.slane %v976_v7, 4  ;;  %v1726_v34 = vrot.slane %v3278_v11, 9  ;;  %v2814_v41 = vcombine.low %v1019_v3, %v1022_v46  ;;  %v3286_v55 = vld [vmem:[#allocation11_spill] sm:$0xff]  ;;  %v3287_v17 = vld [vmem:[#allocation32_spill] sm:$0xff]  ;;  %v3289_v31 = vld [vmem:[#allocation13_spill] sm:$0xff] }
  0x7c   : > { %v1040_v2 = vsel %vm2666_vm6, %v1734_v21, %v1039_v47  ;;  %v1041_v1 = vrot.slane %v1039_v47, 4  ;;  %v983_v20 = vrot.slane %v3279_v49, 5  ;;  %v986_v35 = vrot.slane %v3280_v25, 5  ;;  %v3291_v11 = vld [vmem:[#allocation36_spill] sm:$0xff] }
  0x7d   : > { %v980_v15 = vsel %vm2666_vm6, %v978_v23, %v979_v45  ;;  %v1735_v51 = vrot.slane %v3281_v43, 9  ;;  %v1046_v18 = vrot.slane %v3282_v61, 5  ;;  %v1049_v8 = vrot.slane %v3283_v37, 5  ;;  %v3288_v45 = vld [vmem:[#allocation33_spill] sm:$0xff] }
  0x7e   : > { %v1742_v9 = vcombine.low %v977_v63, %v980_v15  ;;  %v1043_v3 = vsel %vm2666_vm6, %v1041_v1, %v1042_v5  ;;  %v984_v13 = vsel %vm2666_vm6, %v1726_v34, %v983_v20  ;;  %v985_v27 = vrot.slane %v983_v20, 4  ;;  %v3290_v5 = vld [vmem:[#allocation35_spill] sm:$0xff]  ;;  %v3292_v61 = vld [vmem:[#allocation17_spill] sm:$0xff] }
  0x7f   : > { %1820 = vmatpush3.bf16.xpose.msra.mxu0 %v2761_v24  ;;  %v2829_v39 = vcombine.low %v1040_v2, %v1043_v3  ;;  %v1047_v50 = vsel %vm2666_vm6, %v1735_v51, %v1046_v18  ;;  %v1048_v62 = vrot.slane %v1046_v18, 4  ;;  %v1727_v22 = vrot.slane %v3284_v6, 9  ;;  %v3293_v18 = vld [vmem:[#allocation21_spill] sm:$0xff] }
  0x80   : > { %1961 = vmatprep.subr.msk.bf16.mxu0 %vm662_vm0, %v2814_v41  ;;  %v987_v58 = vsel %vm2666_vm6, %v985_v27, %v986_v35  ;;  %v990_v46 = vrot.slane %v3285_v0, 5  ;;  %1840 = vmatpush3.bf16.xpose.msra.mxu1 %v3286_v55  ;;  %v993_v7 = vrot.slane %v3287_v17, 5  ;;  %v1736_v21 = vrot.slane %v3288_v45, 9  ;;  %v3295_v27 = vld [vmem:[#allocation31_spill] sm:$0xff]  ;;  %v2896_v37 = vld [vmem:[%s2228_s5 + $0xc0] sm:$0xf] }
  0x81   : > { %v1743_v30 = vcombine.low %v984_v13, %v987_v58  ;;  %v1050_v40 = vsel %vm2666_vm6, %v1048_v62, %v1049_v8  ;;  %1970 = vmatprep.subr.msk.bf16.mxu1 %vm662_vm0, %v3289_v31  ;;  %v1053_v63 = vrot.slane %v3290_v5, 5  ;;  %v2853_v23 = vsel %vm662_vm0, %v1740_v19, 0  ;;  %v3294_v13 = vld [vmem:[#allocation26_spill] sm:$0xff]  ;;  %v3297_v62 = vld [vmem:[#allocation39_spill] sm:$0xff]  ;;  %v219_v8 = vld [vmem:[%s2228_s5 + $0xc4] sm:$0xf] }
  0x82   : > { %v2847_v38 = vcombine.low %v1047_v50, %v1050_v40  ;;  %v991_v47 = vsel %vm2666_vm6, %v1727_v22, %v990_v46  ;;  %v992_v56 = vrot.slane %v990_v46, 4  ;;  %v1056_v34 = vrot.slane %v3291_v11, 5  ;;  %v3298_v22 = vld [vmem:[#allocation5_spill] sm:$0xff]  ;;  %v3299_v40 = vld [vmem:[#allocation7_spill] sm:$0xff]  ;;  %v3303_v45 = vld [vmem:[#allocation12_spill] sm:$0xff] }
  0x83   : > { %v1728_v2 = vrot.slane %v2628_v53, 9  ;;  %v997_v1 = vrot.slane %v2638_v32, 5  ;;  %v1054_v20 = vsel %vm2666_vm6, %v1736_v21, %v1053_v63  ;;  %v1055_v15 = vrot.slane %v1053_v63, 4  ;;  %v2945_v17 = vld [vmem:[%s3177_s1 + $0x10] sm:$0xf] }
  0x84   : > { %v994_v49 = vsel %vm2666_vm6, %v992_v56, %v993_v7  ;;  %v1000_v25 = vrot.slane %v2645_v29, 5  ;;  %v2878_v3 = vsel %vm662_vm0, %v1741_v52, 0  ;;  %v2887_v50 = vsel %vm662_vm0, %v1742_v9, 0  ;;  %v3296_v52 = vld [vmem:[#allocation38_spill] sm:$0xff]  ;;  %v3300_v7 = vld [vmem:[#allocation8_spill] sm:$0xff]  ;;  %v3305_v21 = vld [vmem:[#allocation19_spill] sm:$0xff] }
  0x85   : > { %v1744_v35 = vcombine.low %v991_v47, %v994_v49  ;;  %v998_v19 = vsel %vm2666_vm6, %v1728_v2, %v997_v1  ;;  %v999_v43 = vrot.slane %v997_v1, 4  ;;  %v1057_v51 = vsel %vm2666_vm6, %v1055_v15, %v1056_v34  ;;  %v3306_v47 = vld [vmem:[#allocation24_spill] sm:$0xff]  ;;  %v3307_v56 = vld [vmem:[#allocation29_spill] sm:$0xff] }
  0x86   : > { %v2868_v53 = vcombine.low %v1054_v20, %v1057_v51  ;;  %v2900_v58 = vsel %vm662_vm0, %v1743_v30, 0  ;;  %v2903_v6 = vcombine.low %v2896_v37, %v219_v8  ;;  %v2916_v0 = vsel %vm662_vm0, %v3298_v22, 0  ;;  %v2930_v30 = vld [vmem:[%s3177_s1 + $0x14] sm:$0xf] }
  0x87   : > { %1822 = vmatpush3.bf16.xpose.msra.mxu0 %v2853_v23  ;;  %v1001_v32 = vsel %vm2666_vm6, %v999_v43, %v1000_v25  ;;  %v2912_v9 = vsel %vm662_vm0, %v1744_v35, 0  ;;  %v1259_v5 = vshrl.u32 %v2896_v37, 16  ;;  %v1262_v63 = vshll.u32 %v2896_v37, 16  ;;  %v220_v25 = vld [vmem:[%s2228_s5 + $0xc8] sm:$0x1] }
  0x88   : > { %1962 = vmatprep.subr.msk.bf16.mxu0 %vm662_vm0, %v2777_v12  ;;  %v1745_v29 = vcombine.low %v998_v19, %v1001_v32  ;;  %1842 = vmatpush3.bf16.xpose.msra.mxu1 %v3292_v61  ;;  %v1272_v11 = vshrl.u32 %v219_v8, 16  ;;  %v1268_v34 = vshll.u32 %v219_v8, 16  ;;  %v1339_v2 = vrot.slane %v219_v8, 5  ;;  %v3308_v35 = vld [vmem:[#allocation34_spill] sm:$0xff]  ;;  %v3309_v32 = vld [vmem:[#allocation37_spill] sm:$0xff] }
  0x89   : > { %1971 = vmatprep.subr.msk.bf16.mxu1 %vm662_vm0, %v3293_v18  ;;  %v1261_v1 = vrot.slane %v1259_v5, 4  ;;  %v1264_v49 = vrot.slane %v1262_v63, 5  ;;  %v1761_v19 = vrot.slane %v2896_v37, 9  ;;  %v1342_v51 = vrot.slane %v220_v25, 5 }
  0x8a   : > { %v2925_v46 = vsel %vm662_vm0, %v1745_v29, 0  ;;  %v1270_v20 = vrot.slane %v1268_v34, 5  ;;  %v1274_v15 = vrot.slane %v1272_v11, 4  ;;  %v1341_v43 = vrot.slane %v1339_v2, 4 }
  0x8b   : > { %v1265_v29 = vor.u32 %v1264_v49, %v1261_v1  ;;  %v1340_v8 = vsel %vm2666_vm6, %v1761_v19, %v1339_v2  ;;  %v1768_v19 = vld [vmem:[%s3177_s1 + $0x1c] sm:$0xf]  ;;  %v866_v28 = vsel %vm662_vm0, %v2307_v59, 0 }
  0x8c   : > { %v1275_v22 = vor.u32 %v1274_v15, %v1270_v20  ;;  %v1343_v5 = vsel %vm2666_vm6, %v1341_v43, %v1342_v51  ;;  %v3003_v15 = vsel %vm662_vm0, %v2701_v33, 0  ;;  %v1765_v33 = vld [vmem:[%s3177_s1 + $0x18] sm:$0xf] }
  0x8d   : > { %v1266_v37 = vrot.slane %v1265_v29, 4  ;;  %v2989_v34 = vcombine.low %v1340_v8, %v1343_v5 }
  0x8e   : > { %v1276_v63 = vrot.slane %v1275_v22, 4 }
  0x8f   : > { %1824 = vmatpush3.bf16.xpose.msra.mxu0 %v2878_v3  ;;  %v1271_v1 = vsel %vm2270_vm3, %v1266_v37, %v1270_v20  ;;  %v3310_v20 = vld [vmem:[#allocation6_spill] sm:$0xff] }
  0x90   : > { %1963 = vmatprep.subr.msk.bf16.mxu0 %vm662_vm0, %v2809_v57  ;;  %1844 = vmatpush3.bf16.xpose.msra.mxu1 %v3294_v13 }
  0x91   : > { %1972 = vmatprep.subr.msk.bf16.mxu1 %vm662_vm0, %v3295_v27 }
  0x97   : > { %1826 = vmatpush3.bf16.xpose.msra.mxu0 %v2887_v50 }
  0x98   : > { %1964 = vmatprep.subr.msk.bf16.mxu0 %vm662_vm0, %v2829_v39  ;;  %1846 = vmatpush3.bf16.xpose.msra.mxu1 %v3296_v52 }
  0x99   : > { %1973 = vmatprep.subr.msk.bf16.mxu1 %vm662_vm0, %v3297_v62 }
  0x9f   : > { %1828 = vmatpush3.bf16.xpose.msra.mxu0 %v2900_v58 }
  0xa0   : > { %1965 = vmatprep.subr.msk.bf16.mxu0 %vm662_vm0, %v2847_v38  ;;  %1848 = vmatpush3.bf16.xpose.msra.mxu1 %v2674_v48 }
  0xa1   : > { %1974 = vmatprep.subr.msk.bf16.mxu1 %vm662_vm0, %v2903_v6 }
  0xa7   : > { %1830 = vmatpush3.bf16.xpose.msra.mxu0 %v2912_v9 }
  0xa8   : > { %1966 = vmatprep.subr.msk.bf16.mxu0 %vm662_vm0, %v2868_v53  ;;  %1850 = vmatpush3.bf16.xpose.msra.mxu1 %v2916_v0 }
  0xa9   : > { %1983 = vmatprep.subr.msk.bf16.mxu1 %vm662_vm0, %v2727_v54 }
  0xaf   : > { %1832 = vmatpush3.bf16.xpose.msra.mxu0 %v2925_v46  ;;  %1852 = vmatmul.mubr.msk.bf16.vlgmr.msra.gmra.mrb[4].mxu1 %vm662_vm0, %v2718_v14  ;;  %v3301_v14 = vld [vmem:[#allocation9_spill] sm:$0xff] }
  0xb0   : > { %1975 = vmatprep.subr.msk.bf16.mxu0 %vm662_vm0, %v3299_v40  ;;  %1872 = vmatpush3.bf16.xpose.msra.mxu1 %v2761_v24  ;;  %v3302_v24 = vld [vmem:[#allocation10_spill] sm:$0xff] }
  0xb1   : > { %1887 = vmatprep.mubr.msk.bf16.mxu1 %vm662_vm0, %v2930_v30  ;;  %1984 = vmatprep.subr.msk.bf16.mxu1 %vm662_vm0, %v2814_v41 }
  0xb6   : > { %1834 = vmatmul.mubr.msk.bf16.vlgmr.msra.gmra.mrb[4].mxu0 %vm662_vm0, %v2758_v36  ;;  %v3304_v36 = vld [vmem:[#allocation14_spill] sm:$0xff] }
  0xb7   : > { %1854 = vmatpush3.bf16.xpose.msra.mxu0 %v3300_v7  ;;  %1869 = vmatprep.mubr.msk.bf16.mxu0 %vm662_vm0, %v2945_v17  ;;  %v1278_v7 = vshll.u32 %v220_v25, 16  ;;  %v691_v25 = vsel %vm662_vm0, %v3310_v20, 0 }
  0xb8   : > { %1976 = vmatprep.subr.msk.bf16.mxu0 %vm662_vm0, %v3301_v14  ;;  %1874 = vmatpush3.bf16.xpose.msra.mxu1 %v2853_v23 }
  0xb9   : > { %1985 = vmatprep.subr.msk.bf16.mxu1 %vm662_vm0, %v2777_v12  ;;  %v1280_v11 = vrot.slane %v1278_v7, 5 }
  0xbb   : > { %v1281_v2 = vsel %vm2270_vm3, %v1276_v63, %v1280_v11 }
  0xbc   : > { %v1759_v49 = vcombine.low %v1271_v1, %v1281_v2 }
  0xbf   : > { %1856 = vmatpush3.bf16.xpose.msra.mxu0 %v3302_v24 }
  0xc0   : > { %1977 = vmatprep.subr.msk.bf16.mxu0 %vm662_vm0, %v3303_v45  ;;  %1876 = vmatpush3.bf16.xpose.msra.mxu1 %v2878_v3 }
  0xc1   : > { %1986 = vmatprep.subr.msk.bf16.mxu1 %vm662_vm0, %v2809_v57 }
  0xc7   : > { %1858 = vmatpush3.bf16.xpose.msra.mxu0 %v3304_v36 }
  0xc8   : > { %1978 = vmatprep.subr.msk.bf16.mxu0 %vm662_vm0, %v3305_v21  ;;  %1878 = vmatpush3.bf16.xpose.msra.mxu1 %v2887_v50 }
  0xc9   : > { %1987 = vmatprep.subr.msk.bf16.mxu1 %vm662_vm0, %v2829_v39 }
  0xcf   : > { %1860 = vmatpush3.bf16.xpose.msra.mxu0 %v3306_v47 }
  0xd0   : > { %1979 = vmatprep.subr.msk.bf16.mxu0 %vm662_vm0, %v3307_v56  ;;  %1880 = vmatpush3.bf16.xpose.msra.mxu1 %v2900_v58 }
  0xd1   : > { %1988 = vmatprep.subr.msk.bf16.mxu1 %vm662_vm0, %v2847_v38 }
  0xd7   : > { %1862 = vmatpush3.bf16.xpose.msra.mxu0 %v3308_v35 }
  0xd8   : > { %1980 = vmatprep.subr.msk.bf16.mxu0 %vm662_vm0, %v3309_v32  ;;  %1882 = vmatpush3.bf16.xpose.msra.mxu1 %v2912_v9 }
  0xd9   : > { %1989 = vmatprep.subr.msk.bf16.mxu1 %vm662_vm0, %v2868_v53 }
  0xdf   : > { %1864 = vmatpush3.bf16.xpose.msra.mxu0 %v2655_v44 }
  0xe0   : > { %1981 = vmatprep.subr.msk.bf16.mxu0 %vm662_vm0, %v2671_v16  ;;  %1884 = vmatpush3.bf16.xpose.msra.mxu1 %v2925_v46 }
  0xe1   : > { %1990 = vmatprep.subr.msk.bf16.mxu1 %vm662_vm0, %v2989_v34 }
  0xe7   : > { %1866 = vmatpush3.bf16.xpose.msra.mxu0 %v2710_v4 }
  0xe8   : > { %1982 = vmatprep.subr.msk.bf16.mxu0 %vm662_vm0, %v1759_v49  ;;  %1886 = vmatpush3.bf16.xpose.msra.mxu1 %v3003_v15 }
  0xe9   : > { %1999 = vmatprep.subr.msk.bf16.mxu1 %vm662_vm0, %v3301_v14 }
  0xef   : > { %1868 = vmatpush3.bf16.xpose.msra.mxu0 %v691_v25  ;;  %1888 = vmatmul.mubr.msk.bf16.vlgmr.msra.gmra.mrb[8].mxu1 %vm662_vm0, %v2930_v30 }
  0xf0   : > { %1991 = vmatprep.subr.msk.bf16.mxu0 %vm662_vm0, %v2360_v60  ;;  %1908 = vmatpush3.bf16.xpose.msra.mxu1 %v3302_v24  ;;  %v3045_v60 = vld [vmem:[%s2228_s5 + $0xcc] sm:$0xf]  ;;  %v3061_v24 = vld [vmem:[%s2228_s5 + $0xd4] sm:$0x1] }
  0xf1   : > { %1923 = vmatprep.mubr.msk.bf16.mxu1 %vm662_vm0, %v1768_v19  ;;  %2000 = vmatprep.subr.msk.bf16.mxu1 %vm662_vm0, %v3303_v45 }
  0xf6   : > { %1870 = vmatmul.mubr.msk.bf16.vlgmr.msra.gmra.mrb[8].mxu0 %vm662_vm0, %v2945_v17 }
  0xf7   : > { %1890 = vmatpush3.bf16.xpose.msra.mxu0 %v2395_v42  ;;  %1905 = vmatprep.mubr.msk.bf16.mxu0 %vm662_vm0, %v1765_v33  ;;  %v3048_v42 = vld [vmem:[%s2228_s5 + $0xd0] sm:$0xf]  ;;  %s1684_s5 = sshll.u32 %s161_s4, 4 }
  0xf8   : > { %1992 = vmatprep.subr.msk.bf16.mxu0 %vm662_vm0, %v2416_v10  ;;  %1910 = vmatpush3.bf16.xpose.msra.mxu1 %v3304_v36  ;;  %v1455_v10 = vshrl.u32 %v3045_v60, 16  ;;  %s163_s7 = scalar_lea.vmem [#allocation2], %s1684_s5 }
  0xf9   : > { %2001 = vmatprep.subr.msk.bf16.mxu1 %vm662_vm0, %v3305_v21  ;;  %v1474_v21 = vshll.u32 %v3061_v24, 16  ;;  %s1621_s8 = sshll.u32 %s163_s7, 4  ;;  %s3136_s8 = int_to_ptr.vmem [resolvable:$true] %s1621_s8 }
  0xfa   : > { %s2075_s19 = scalar_lea.vmem %s3136_s8, 256  ;;  %p2082_p0 = scmp.lt.s32.totalorder %s3136_s8, %s2080_s20 }
  0xfb   : > { %p2076_p11 = scmp.ne.s32.totalorder %s3136_s8, %s2075_s19  ;;  %p2083_p1 = scmp.lt.s32.totalorder %s2081_s24, %s2075_s19 }
  0xfd   : > { %p2077_p12 = pnand %p2076_p11, %p2199_p5  ;;  %p2084_p2 = por %p2083_p1, %p2082_p0 }
  0xff   : > { %1892 = vmatpush3.bf16.xpose.msra.mxu0 %v3286_v55  ;;  %v1458_v55 = vshll.u32 %v3045_v60, 16  ;;  %p2078_p13 = pneg %p2077_p12 }
 0x100   : > { %1993 = vmatprep.subr.msk.bf16.mxu0 %vm662_vm0, %v3289_v31  ;;  %1912 = vmatpush3.bf16.xpose.msra.mxu1 %v3306_v47  ;;  %v1468_v31 = vshrl.u32 %v3048_v42, 16 }
 0x101   : > { %2002 = vmatprep.subr.msk.bf16.mxu1 %vm662_vm0, %v3307_v56  ;;  %v1460_v30 = vrot.slane %v1458_v55, 5  ;;  %v1476_v56 = vrot.slane %v1474_v21, 5  ;;  %p2085_p3 = pnand %p2084_p2, %p2078_p13 }
 0x102   : > { %v1470_v14 = vrot.slane %v1468_v31, 4 }
 0x107   : > { %1894 = vmatpush3.bf16.xpose.msra.mxu0 %v3292_v61  ;;  %v1464_v61 = vshll.u32 %v3048_v42, 16 }
 0x108   : > { %1994 = vmatprep.subr.msk.bf16.mxu0 %vm662_vm0, %v3293_v18  ;;  %1914 = vmatpush3.bf16.xpose.msra.mxu1 %v3308_v35  ;;  %v1457_v18 = vrot.slane %v1455_v10, 4 }
 0x109   : > { %2003 = vmatprep.subr.msk.bf16.mxu1 %vm662_vm0, %v3309_v32  ;;  %v1466_v17 = vrot.slane %v1464_v61, 5  ;;  %v1538_v32 = vrot.slane %v3061_v24, 5 }
 0x10a   : > { %v1461_v45 = vor.u32 %v1460_v30, %v1457_v18 }
 0x10b   : > { %v1471_v36 = vor.u32 %v1470_v14, %v1466_v17 }
 0x10d   : > { %v1472_v47 = vrot.slane %v1471_v36, 4 }
 0x10f   : > { %1896 = vmatpush3.bf16.xpose.msra.mxu0 %v3294_v13  ;;  %v1462_v13 = vrot.slane %v1461_v45, 4 }
 0x110   : > { %1995 = vmatprep.subr.msk.bf16.mxu0 %vm662_vm0, %v3295_v27  ;;  %1916 = vmatpush3.bf16.xpose.msra.mxu1 %v2655_v44 }
 0x111   : > { %2004 = vmatprep.subr.msk.bf16.mxu1 %vm662_vm0, %v2671_v16  ;;  %v1467_v44 = vsel %vm2270_vm3, %v1462_v13, %v1466_v17  ;;  %v1477_v16 = vsel %vm2270_vm3, %v1472_v47, %v1476_v56 }
 0x112   : > { %v1769_v27 = vcombine.low %v1467_v44, %v1477_v16 }
 0x117   : > { %1898 = vmatpush3.bf16.xpose.msra.mxu0 %v3296_v52  ;;  %v694_v52 = vsel %vm662_vm0, %v3299_v40, 0 }
 0x118   : > { %1996 = vmatprep.subr.msk.bf16.mxu0 %vm662_vm0, %v3297_v62  ;;  %1918 = vmatpush3.bf16.xpose.msra.mxu1 %v2710_v4  ;;  %v1766_v4 = vcombine.low %v3045_v60, %v3048_v42 }
 0x119   : > { %2005 = vmatprep.subr.msk.bf16.mxu1 %vm662_vm0, %v1759_v49 }
 0x11f   : > { %1900 = vmatpush3.bf16.xpose.msra.mxu0 %v2674_v48  ;;  %v1772_v48 = vld [vmem:[%s3177_s1 + $0x20] sm:$0xf] }
 0x120   : > { %1997 = vmatprep.subr.msk.bf16.mxu0 %vm662_vm0, %v2903_v6  ;;  %1920 = vmatpush3.bf16.xpose.msra.mxu1 %v691_v25 }
 0x121   : > { %2006 = vmatprep.subr.msk.bf16.mxu1 %vm662_vm0, %v1769_v27 }
 0x127   : > { %1902 = vmatpush3.bf16.xpose.msra.mxu0 %v2916_v0 }
 0x128   : > { %1998 = vmatprep.subr.msk.bf16.mxu0 %vm662_vm0, %v1766_v4  ;;  %1922 = vmatpush3.bf16.xpose.msra.mxu1 %v694_v52 }
 0x12f   : > { %1904 = vmatpush3.bf16.xpose.msra.mxu0 %v866_v28  ;;  %1924 = vmatmul.mubr.msk.bf16.vlgmr.msra.gmra.mrb[12].mxu1 %vm662_vm0, %v1768_v19 }
 0x130   : > { %2007 = vmatprep.subr.msk.bf16.mxu0 %vm662_vm0, %v2814_v41 }
 0x136   : > { %1906 = vmatmul.mubr.msk.bf16.vlgmr.msra.gmra.mrb[12].mxu0 %vm662_vm0, %v1765_v33 }
 0x137   : > { %1926 = vmatpush3.bf16.xpose.msra.mxu0 %v2853_v23  ;;  %1941 = vmatprep.mubr.msk.bf16.mxu0 %vm662_vm0, %v1772_v48 }
 0x138   : > { %2008 = vmatprep.subr.msk.bf16.mxu0 %vm662_vm0, %v2777_v12  ;;  %v2139_v12 = vmov 0  }
 0x139   : > { %2056 = vset.pattern.permute.xlu0 %v2139_v12 }
 0x13f   : > { %1928 = vmatpush3.bf16.xpose.msra.mxu0 %v2878_v3 }
 0x140   : > { %2009 = vmatprep.subr.msk.bf16.mxu0 %vm662_vm0, %v2809_v57  ;;  %v1594_v57 = vld [vmem:[%s3178_s2] sm:$0xff] }
 0x141   : > { %1597 = vperm.xlu0 %2056, %v1594_v57  }
 0x142   : > { %v920_v59 = vpop.f32.mrb[0].mxu1 }
 0x143   : > { %v922_v41 = vpop.f32.mrb[1].mxu1 }
 0x144   : > { %v924_v62 = vpop.f32.mrb[2].mxu1 }
 0x145   : > { %v925_v6 = vpop.f32.mrb[3].mxu1 }
 0x147   : > { %1930 = vmatpush3.bf16.xpose.msra.mxu0 %v2887_v50  ;;  %v1771_v50 = vrot.slane %v3045_v60, 9 }
 0x148   : > { %2010 = vmatprep.subr.msk.bf16.mxu0 %vm662_vm0, %v2829_v39  ;;  %v1535_v39 = vrot.slane %v3048_v42, 5 }
 0x149   : > { %v748_v23 = vpop.f32.mrb[0].mxu0 }
 0x14a   : > { %v921_v0 = vadd.f32 %v920_v59, %v748_v23  ;;  %v750_v40 = vpop.f32.mrb[1].mxu0  ;;  %v1537_v51 = vrot.slane %v1535_v39, 4 }
 0x14b   : > { %v923_v35 = vadd.f32 %v922_v41, %v750_v40  ;;  %v752_v43 = vpop.f32.mrb[2].mxu0 }
 0x14c   : > { %v753_v3 = vpop.f32.mrb[3].mxu0 }
 0x14f   : > { %1932 = vmatpush3.bf16.xpose.msra.mxu0 %v2900_v58  ;;  %v1539_v58 = vsel %vm2666_vm6, %v1537_v51, %v1538_v32 }
 0x150   : > { %2011 = vmatprep.subr.msk.bf16.mxu0 %vm662_vm0, %v2847_v38  ;;  %v1536_v38 = vsel %vm2666_vm6, %v1771_v50, %v1535_v39 }
 0x157   : > { %1934 = vmatpush3.bf16.xpose.msra.mxu0 %v2912_v9  ;;  %v1773_v9 = vcombine.low %v1536_v38, %v1539_v58 }
 0x158   : > { %2012 = vmatprep.subr.msk.bf16.mxu0 %vm662_vm0, %v2868_v53  ;;  %v1139_v53 = vsel %vm662_vm0, %v2727_v54, 0 }
 0x15f   : > { %1936 = vmatpush3.bf16.xpose.msra.mxu0 %v2925_v46 }
 0x160   : > { %2013 = vmatprep.subr.msk.bf16.mxu0 %vm662_vm0, %v2989_v34 }
 0x167   : > { %1938 = vmatpush3.bf16.xpose.msra.mxu0 %v3003_v15 }
 0x168   : > { %2014 = vmatprep.subr.msk.bf16.mxu0 %vm662_vm0, %v1773_v9 }
 0x16f   : > { %1940 = vmatpush3.bf16.xpose.msra.mxu0 %v1139_v53 }
 0x176   : > { %1942 = vmatmul.mubr.msk.bf16.vlgmr.msra.gmra.mrb[16].mxu0 %vm662_vm0, %v1772_v48 }
 0x182   : > { %v1249_v46 = vpop.f32.mrb[4].mxu1 }
 0x183   : > { %v1251_v29 = vpop.f32.mrb[5].mxu1 }
 0x184   : > { %v1253_v22 = vpop.f32.mrb[6].mxu1 }
 0x185   : > { %v1254_v7 = vpop.f32.mrb[7].mxu1 }
 0x189   : > { %v1193_v8 = vpop.f32.mrb[4].mxu0 }
 0x18a   : > { %v1200_v5 = vadd.f32 %v1193_v8, %v921_v0  ;;  %v1195_v37 = vpop.f32.mrb[5].mxu0 }
 0x18b   : > { %v1201_v26 = vadd.f32 %v1195_v37, %v923_v35  ;;  %v1197_v63 = vpop.f32.mrb[6].mxu0 }
 0x18c   : > { %v1256_v11 = vadd.f32 %v1249_v46, %v1200_v5  ;;  %v1198_v34 = vpop.f32.mrb[7].mxu0 }
 0x18d   : > { %v1257_v1 = vadd.f32 %v1251_v29, %v1201_v26 }
 0x1c0   : > { %v1598_v44 = vpop.permute.xlu0 %1597 }
 0x1c2   : > { %v1389_v2 = vpop.f32.mrb[8].mxu1 }
 0x1c3   : > { %v1391_v49 = vpop.f32.mrb[9].mxu1 }
 0x1c4   : > { %v1393_v15 = vpop.f32.mrb[10].mxu1 }
 0x1c5   : > { %v1394_v20 = vpop.f32.mrb[11].mxu1 }
 0x1c9   : > { %v1327_v54 = vpop.f32.mrb[8].mxu0 }
 0x1ca   : > { %v1334_v25 = vadd.f32 %v1327_v54, %v1256_v11  ;;  %v1329_v19 = vpop.f32.mrb[9].mxu0 }
 0x1cb   : > { %v1335_v33 = vadd.f32 %v1329_v19, %v1257_v1  ;;  %v1331_v60 = vpop.f32.mrb[10].mxu0 }
 0x1cc   : > { %v1396_v42 = vadd.f32 %v1389_v2, %v1334_v25  ;;  %v1332_v10 = vpop.f32.mrb[11].mxu0 }
 0x1cd   : > { %v1397_v55 = vadd.f32 %v1391_v49, %v1335_v33 }
 0x202   : > { %v1523_v31 = vpop.f32.mrb[12].mxu1 }
 0x203   : > { %v1525_v61 = vpop.f32.mrb[13].mxu1 }
 0x204   : > { %v1527_v18 = vpop.f32.mrb[14].mxu1 }
 0x205   : > { %v1528_v30 = vpop.f32.mrb[15].mxu1 }
 0x209   : > { %v1445_v17 = vpop.f32.mrb[12].mxu0 }
 0x20a   : > { %v1452_v14 = vadd.f32 %v1445_v17, %v1396_v42  ;;  %v1447_v24 = vpop.f32.mrb[13].mxu0 }
 0x20b   : > { %v1453_v45 = vadd.f32 %v1447_v24, %v1397_v55  ;;  %v1449_v36 = vpop.f32.mrb[14].mxu0 }
 0x20c   : > { %v1530_v21 = vadd.f32 %v1523_v31, %v1452_v14  ;;  %v1450_v13 = vpop.f32.mrb[15].mxu0 }
 0x20d   : > { %v1531_v47 = vadd.f32 %v1525_v61, %v1453_v45 }
 0x249   : > { %v1585_v56 = vpop.f32.mrb[16].mxu0 }
 0x24a   : > { %v1592_v16 = vadd.f32 %v1585_v56, %v1530_v21  ;;  %v1587_v27 = vpop.f32.mrb[17].mxu0 }
 0x24b   : > { %v1593_v4 = vadd.f32 %v1587_v27, %v1531_v47  ;;  %v1589_v52 = vpop.f32.mrb[18].mxu0 }
 0x24c   : > { %v1600_v28 = vadd.f32 %v1598_v44, %v1592_v16  ;;  %v1590_v48 = vpop.f32.mrb[19].mxu0 }
 0x24d   : > { %v1601_v59 = vadd.f32 %v1598_v44, %v1593_v4 }
 0x24e   : > { %v1602_v41 = vmax.f32 %v1600_v28, 0.0 }
 0x24f   : > { %v1603_v62 = vmax.f32 %v1601_v59, 0.0 }
 0x250   : > { %1604 = vst [vmem:[%s163_s7] sm:$0xff] %v1602_v41 }
 0x251   : > { %1605 = vst [vmem:[%s163_s7 + $0x8] sm:$0xff] %v1603_v62 }
 0x252   : > { %2088 = shalt.err (!%p2085_p3)
}
 0x253   : > { %s2089_s25 = scalar_lea.hbm %s3134_s11, 256  ;;  %s2093_s28 = scalar_lea.hbm %s3179_s3, 512 }
 0x254   : > { %p2090_p4 = scmp.ne.s32.totalorder %s3134_s11, %s2089_s25  ;;  %p2094_p9 = scmp.lt.u32.totalorder %s3134_s11, %s3179_s3 }
 0x255   : > { %p2095_p10 = scmp.lt.u32.totalorder %s2093_s28, %s2089_s25  ;;  %p2097_p12 = scmp.lt.u32.totalorder %s2089_s25, %s3134_s11 }
 0x256   : > { %p2091_p7 = pnand %p2090_p4, %p2199_p5 }
 0x257   : > { %p2096_p11 = por %p2095_p10, %p2094_p9 }
 0x258   : > { %p2092_p8 = pneg %p2091_p7 }
 0x259   : > { %p2098_p13 = por %p2097_p12, %p2096_p11 }
 0x25b   : > { %p2099_p0 = pnand %p2098_p13, %p2092_p8 }
 0x25d   : > { %2102 = shalt.err (!%p2099_p0)
}
 0x25e   : > { %2016 = dma.vmem_to_hbm [thread:$0]  (%p2199_p5), %s3136_s8, 256, %s3134_s11, %s1607_s17  }
 0x25f PF: > { %p2022_p1 = scmp.ge.s32.totalorder %s2137_s15, 2  ;;  %s1633_s4 = sand.u32 1, %s2125_s12  }
 0x260   : > { %s1634_s5 = scalar_lea.sflag [#allocation3], %s1633_s4 }
 0x261   : > { %p2019_p2 = pnand %p2022_p1, %p2203_p6 }
 0x263   : > { %2120 = dma.done.wait (!%p2019_p2), %s1634_s5, 256  }
 0x264   : > { %2122 = vsyncadd (!%p2019_p2), %s1634_s5, 4294967040  ;;  %p13_p3 = scmp.ge.s32.totalorder %s2186_s18, 4   ;;  %s3311_s12 = smov %s2129_s13 }
 0x265   : > { %s3312_s13 = smov %s2133_s14  ;;  %s3313_s14 = smov %s2197_s21 }
 0x266   : > { %s3314_s15 = smov %s2186_s18  ;;  %15 = sbr.rel (!%p13_p3) target bundleno = 3 (0x3), region = 75 }
 0x26d   :  { %1639 = vsyncpa [#allocation3], 1 }
 0x26e   :  { %1641 = vsyncpa [#allocation3 + $0x1], 1 }

</bundles_post_ra>
